<compile_context>
chip_gen: v7x
topology: tpu7x:2x2x1
jax: 0.10.0
libtpu: 0.0.40
codegen_flags: <defaults>
</compile_context>

<pallas_src>
import functools

import jax
import jax.numpy as jnp
from jax import lax
from jax.experimental import pallas as pl
from jax.experimental.pallas import tpu as pltpu


def bottle_block_kernel(xb_ref, xt_ref, xd_ref, w1_ref, w2_ref, w3_ref,
                        s1_ref, b1_ref, s2_ref, b2_ref, s3_ref, b3_ref,
                        o_ref, *, TH, W, P, C):
    # xb_ref: (1, TH, W, C) f32   -- body rows of this tile (also the residual)
    # xt_ref: (1, 1,  W, C) f32   -- row above the tile (clamped duplicate at t==0)
    # xd_ref: (1, 1,  W, C) f32   -- row below the tile (clamped duplicate at t==T-1)
    # w1_ref: (C, P)       bf16   -- conv1 1x1 as matmul
    # w2_ref: (3, 3P, P)   bf16   -- conv2 3x3, one K=3P slab per ky (rows = kx*P + cin)
    # w3_ref: (P, C)       bf16   -- conv3 1x1 as matmul
    # s*/b* : (1, ch)      f32    -- folded inference BatchNorm scale / bias
    # o_ref : (1, TH, W, C) f32
    t = pl.program_id(1)
    num_t = pl.num_programs(1)
    top_ok = (t > 0).astype(jnp.bfloat16)            # is the top halo row inside the image?
    bot_ok = (t < num_t - 1).astype(jnp.bfloat16)    # is the bottom halo row inside the image?

    def conv1_bn_relu(xpart):                        # (R, W, C) f32 -> (R, W, P) bf16
        r = xpart.shape[0]
        h = jnp.dot(xpart.reshape(r * W, C).astype(jnp.bfloat16), w1_ref[...],
                    preferred_element_type=jnp.float32)
        h = jnp.maximum(h * s1_ref[...] + b1_ref[...], 0.0)
        return h.astype(jnp.bfloat16).reshape(r, W, P)

    # ---- conv1 (1x1) + BN1 + ReLU; boundary-only masking of out-of-image halo rows
    # (conv2's SAME zero padding lives in h1-space, so masking is applied to h1).
    h1 = jnp.concatenate([conv1_bn_relu(xt_ref[0]) * top_ok,
                          conv1_bn_relu(xb_ref[0]),
                          conv1_bn_relu(xd_ref[0]) * bot_ok],
                         axis=0)                     # (TH+2, W, P) bf16

    # ---- conv2 (3x3, stride 1, pad 1): three K=3P im2col matmuls, f32 accumulate.
    # Column-shifted bf16 copies supply the +/-1 W offsets (zero at image edges).
    zcol = jnp.zeros((TH + 2, 1, P), jnp.bfloat16)
    shl = jnp.concatenate([zcol, h1[:, :W - 1, :]], axis=1)   # col x holds h1[x-1]
    shr = jnp.concatenate([h1[:, 1:, :], zcol], axis=1)       # col x holds h1[x+1]
    shifted = (shl, h1, shr)                                  # index = kx

    acc = None
    for ky in range(3):
        slab = jnp.concatenate([shifted[kx][ky:ky + TH] for kx in range(3)],
                               axis=-1)                       # (TH, W, 3P) bf16
        part = jnp.dot(slab.reshape(TH * W, 3 * P), w2_ref[ky],
                       preferred_element_type=jnp.float32)
        acc = part if acc is None else acc + part
    h2 = jnp.maximum(acc * s2_ref[...] + b2_ref[...], 0.0)    # (TH*W, P) f32

    # ---- conv3 (1x1) + BN3, residual add, final ReLU ----
    h3 = jnp.dot(h2.astype(jnp.bfloat16), w3_ref[...],
                 preferred_element_type=jnp.float32)
    h3 = h3 * s3_ref[...] + b3_ref[...]                       # (TH*W, C) f32
    res = xb_ref[0].reshape(TH * W, C)                        # re-read residual late
    o_ref[...] = jnp.maximum(h3 + res, 0.0).reshape(1, TH, W, C)


def bottle_block_pallas(x_nhwc, w1, w2_hwio, w3, s1, b1, s2, b2, s3, b3, *, tile_h=16):
    N, H, W, C = x_nhwc.shape
    P = w1.shape[1]
    TH = min(tile_h, H)
    assert H % TH == 0, "H must be divisible by the row-tile size"
    T = H // TH

    # Weights feed the MXU in bf16; BN scale/bias stay f32 for the epilogues.
    w1b = w1.astype(jnp.bfloat16)
    w2b = w2_hwio.reshape(3, 3 * P, P).astype(jnp.bfloat16)   # per-ky K=3P slabs
    w3b = w3.astype(jnp.bfloat16)

    kernel = functools.partial(bottle_block_kernel, TH=TH, W=W, P=P, C=C)

    def resident(a):   # weights / BN params: constant index_map -> stay resident in VMEM
        return pl.BlockSpec(a.shape, lambda n, t: (0,) * a.ndim)

    body_spec = pl.BlockSpec((1, TH, W, C), lambda n, t: (n, t, 0, 0))
    # Halo rows come straight from x with edge-clamped row indices (no padded or
    # gathered copy of x).  Clamped duplicates are zeroed in-kernel (boundary mask).
    top_spec = pl.BlockSpec((1, 1, W, C),
                            lambda n, t: (n, jnp.maximum(t * TH - 1, 0), 0, 0))
    bot_spec = pl.BlockSpec((1, 1, W, C),
                            lambda n, t: (n, jnp.minimum((t + 1) * TH, H - 1), 0, 0))

    return pl.pallas_call(
        kernel,
        out_shape=jax.ShapeDtypeStruct((N, H, W, C), jnp.float32),
        grid_spec=pltpu.PrefetchScalarGridSpec(
            num_scalar_prefetch=0,
            grid=(N, T),
            in_specs=[body_spec, top_spec, bot_spec,
                      resident(w1b), resident(w2b), resident(w3b),
                      resident(s1), resident(b1), resident(s2), resident(b2),
                      resident(s3), resident(b3)],
            out_specs=pl.BlockSpec((1, TH, W, C), lambda n, t: (n, t, 0, 0)),
        ),
        compiler_params=pltpu.CompilerParams(
            dimension_semantics=("parallel", "parallel"),
            vmem_limit_bytes=64 * 1024 * 1024),
    )(x_nhwc, x_nhwc, x_nhwc, w1b, w2b, w3b, s1, b1, s2, b2, s3, b3)


def fold_bn(gamma, beta, mean, var, eps=1e-5):
    scale = gamma / jnp.sqrt(var + eps)
    bias = beta - mean * scale
    return scale[None, :], bias[None, :]


def reference_block(x_nhwc, w1, w2_hwio, w3, s1, b1, s2, b2, s3, b3):
    # Pure-JAX reference mirroring the kernel's bf16-MXU / f32-epilogue math.
    xb = x_nhwc.astype(jnp.bfloat16)
    h1 = jnp.einsum('nhwc,cp->nhwp', xb, w1.astype(jnp.bfloat16),
                    preferred_element_type=jnp.float32)
    h1 = jnp.maximum(h1 * s1 + b1, 0.0)
    h2 = lax.conv_general_dilated(
        h1.astype(jnp.bfloat16), w2_hwio.astype(jnp.bfloat16),
        window_strides=(1, 1), padding='SAME',
        dimension_numbers=('NHWC', 'HWIO', 'NHWC'),
        preferred_element_type=jnp.float32)
    h2 = jnp.maximum(h2 * s2 + b2, 0.0)
    h3 = jnp.einsum('nhwp,pc->nhwc', h2.astype(jnp.bfloat16),
                    w3.astype(jnp.bfloat16),
                    preferred_element_type=jnp.float32)
    h3 = h3 * s3 + b3
    return jnp.maximum(h3 + x_nhwc, 0.0)


if __name__ == "__main__":
    # Small shapes: inplanes = planes * expansion so the identity residual is valid.
    N, planes = 2, 4
    inplanes = planes * 4          # 16
    H = W = 16                     # two row tiles of 8 -> exercises the halo path

    key = jax.random.PRNGKey(0)
    keys = jax.random.split(key, 8)

    # Input in PyTorch NCHW convention, transposed to the kernel's NHWC layout.
    x_nchw = jax.random.normal(keys[0], (N, inplanes, H, W), jnp.float32)
    x_nhwc = jnp.transpose(x_nchw, (0, 2, 3, 1))

    # Conv weights stored directly in (in, out) / HWIO layout (bias=False in the module).
    w1 = 0.1 * jax.random.normal(keys[1], (inplanes, planes), jnp.float32)
    w2_hwio = 0.1 * jax.random.normal(keys[2], (3, 3, planes, planes), jnp.float32)
    w3 = 0.1 * jax.random.normal(keys[3], (planes, inplanes), jnp.float32)

    # Deterministic inference-mode BatchNorm params, folded to scale/bias.
    def bn_params(k, ch):
        kg, kb, km, kv = jax.random.split(k, 4)
        gamma = 1.0 + 0.1 * jax.random.normal(kg, (ch,), jnp.float32)
        beta = 0.1 * jax.random.normal(kb, (ch,), jnp.float32)
        mean = 0.1 * jax.random.normal(km, (ch,), jnp.float32)
        var = 1.0 + 0.1 * jnp.abs(jax.random.normal(kv, (ch,), jnp.float32))
        return fold_bn(gamma, beta, mean, var)

    s1, b1 = bn_params(keys[4], planes)
    s2, b2 = bn_params(keys[5], planes)
    s3, b3 = bn_params(keys[6], inplanes)

    out = bottle_block_pallas(x_nhwc, w1, w2_hwio, w3,
                              s1, b1, s2, b2, s3, b3, tile_h=8)
    out = jax.block_until_ready(out)

    ref = reference_block(x_nhwc, w1, w2_hwio, w3, s1, b1, s2, b2, s3, b3)
    assert out.shape == (N, H, W, inplanes)
    max_err = float(jnp.max(jnp.abs(out - ref)))
    assert jnp.allclose(out, ref, atol=2e-2, rtol=2e-2), \
        f"mismatch vs JAX reference (max err {max_err})"

    print("KERNEL_OK")
</pallas_src>

<mosaic_0001>
module attributes {stable_mosaic.version = 11 : i64} {
  func.func @bottle_block_kernel(%arg0: i32, %arg1: i32, %arg2: memref<1x8x16x16xf32, #tpu.memory_space<vmem>>, %arg3: memref<1x1x16x16xf32, #tpu.memory_space<vmem>>, %arg4: memref<1x1x16x16xf32, #tpu.memory_space<vmem>>, %arg5: memref<16x4xbf16, #tpu.memory_space<vmem>>, %arg6: memref<3x12x4xbf16, #tpu.memory_space<vmem>>, %arg7: memref<4x16xbf16, #tpu.memory_space<vmem>>, %arg8: memref<1x4xf32, #tpu.memory_space<vmem>>, %arg9: memref<1x4xf32, #tpu.memory_space<vmem>>, %arg10: memref<1x4xf32, #tpu.memory_space<vmem>>, %arg11: memref<1x4xf32, #tpu.memory_space<vmem>>, %arg12: memref<1x16xf32, #tpu.memory_space<vmem>>, %arg13: memref<1x16xf32, #tpu.memory_space<vmem>>, %arg14: memref<1x8x16x16xf32, #tpu.memory_space<vmem>>) attributes {dimension_semantics = [#tpu.dimension_semantics<parallel>, #tpu.dimension_semantics<parallel>], iteration_bounds = array<i64: 2, 2>, scalar_prefetch = 0 : i64, scratch_operands = 0 : i64, tpu.core_type = #tpu.core_type<tc>, window_params = [{transform_indices = @transform_0, window_bounds = array<i64: 1, 8, 16, 16>}, {transform_indices = @transform_1, window_bounds = array<i64: 1, 1, 16, 16>}, {transform_indices = @transform_2, window_bounds = array<i64: 1, 1, 16, 16>}, {pipeline_mode = #tpu.pipeline_mode<synchronous>, transform_indices = @transform_3, window_bounds = array<i64: 16, 4>}, {pipeline_mode = #tpu.pipeline_mode<synchronous>, transform_indices = @transform_4, window_bounds = array<i64: 3, 12, 4>}, {pipeline_mode = #tpu.pipeline_mode<synchronous>, transform_indices = @transform_5, window_bounds = array<i64: 4, 16>}, {pipeline_mode = #tpu.pipeline_mode<synchronous>, transform_indices = @transform_6, window_bounds = array<i64: 1, 4>}, {pipeline_mode = #tpu.pipeline_mode<synchronous>, transform_indices = @transform_7, window_bounds = array<i64: 1, 4>}, {pipeline_mode = #tpu.pipeline_mode<synchronous>, transform_indices = @transform_8, window_bounds = array<i64: 1, 4>}, {pipeline_mode = #tpu.pipeline_mode<synchronous>, transform_indices = @transform_9, window_bounds = array<i64: 1, 4>}, {pipeline_mode = #tpu.pipeline_mode<synchronous>, transform_indices = @transform_10, window_bounds = array<i64: 1, 16>}, {pipeline_mode = #tpu.pipeline_mode<synchronous>, transform_indices = @transform_11, window_bounds = array<i64: 1, 16>}, {transform_indices = @transform_12, window_bounds = array<i64: 1, 8, 16, 16>}]} {
    %c0_i32 = arith.constant 0 : i32
    %0 = arith.cmpi sgt, %arg1, %c0_i32 : i32
    %1 = arith.extui %0 : i1 to i32
    %2 = arith.sitofp %1 : i32 to f32
    %3 = arith.truncf %2 : f32 to bf16
    %c1_i32 = arith.constant 1 : i32
    %4 = arith.cmpi slt, %arg1, %c1_i32 : i32
    %5 = arith.extui %4 : i1 to i32
    %6 = arith.sitofp %5 : i32 to f32
    %7 = arith.truncf %6 : f32 to bf16
    %c0 = arith.constant 0 : index
    %c0_0 = arith.constant 0 : index
    %c0_1 = arith.constant 0 : index
    %c0_2 = arith.constant 0 : index
    %8 = vector.load %arg3[%c0, %c0_0, %c0_1, %c0_2] : memref<1x1x16x16xf32, #tpu.memory_space<vmem>>, vector<1x1x16x16xf32>
    %9 = vector.shape_cast %8 : vector<1x1x16x16xf32> to vector<1x16x16xf32>
    %10 = vector.shape_cast %9 : vector<1x16x16xf32> to vector<16x16xf32>
    %11 = arith.truncf %10 : vector<16x16xf32> to vector<16x16xbf16>
    %c0_3 = arith.constant 0 : index
    %c0_4 = arith.constant 0 : index
    %12 = vector.load %arg5[%c0_3, %c0_4] : memref<16x4xbf16, #tpu.memory_space<vmem>>, vector<16x4xbf16>
    %cst = arith.constant dense<0.000000e+00> : vector<16x4xf32>
    %13 = tpu.matmul %11, %12, %cst {dimension_numbers = #tpu.dot_dimension_numbers<[1], [0], [0], [1], [0, 0, 1, 1], [], []>} : vector<16x16xbf16>, vector<16x4xbf16>, vector<16x4xf32> -> vector<16x4xf32>
    %c0_5 = arith.constant 0 : index
    %c0_6 = arith.constant 0 : index
    %14 = vector.load %arg8[%c0_5, %c0_6] : memref<1x4xf32, #tpu.memory_space<vmem>>, vector<1x4xf32>
    %15 = vector.broadcast %14 : vector<1x4xf32> to vector<16x4xf32>
    %16 = arith.mulf %13, %15 : vector<16x4xf32>
    %c0_7 = arith.constant 0 : index
    %c0_8 = arith.constant 0 : index
    %17 = vector.load %arg9[%c0_7, %c0_8] : memref<1x4xf32, #tpu.memory_space<vmem>>, vector<1x4xf32>
    %18 = vector.broadcast %17 : vector<1x4xf32> to vector<16x4xf32>
    %19 = arith.addf %16, %18 : vector<16x4xf32>
    %cst_9 = arith.constant 0.000000e+00 : f32
    %20 = vector.broadcast %cst_9 : f32 to vector<16x4xf32>
    %21 = arith.maximumf %19, %20 : vector<16x4xf32>
    %22 = arith.truncf %21 : vector<16x4xf32> to vector<16x4xbf16>
    %23 = vector.shape_cast %22 : vector<16x4xbf16> to vector<1x16x4xbf16>
    %24 = vector.broadcast %3 : bf16 to vector<1x16x4xbf16>
    %25 = arith.mulf %23, %24 : vector<1x16x4xbf16>
    %c0_10 = arith.constant 0 : index
    %c0_11 = arith.constant 0 : index
    %c0_12 = arith.constant 0 : index
    %c0_13 = arith.constant 0 : index
    %26 = vector.load %arg2[%c0_10, %c0_11, %c0_12, %c0_13] : memref<1x8x16x16xf32, #tpu.memory_space<vmem>>, vector<1x8x16x16xf32>
    %27 = vector.shape_cast %26 : vector<1x8x16x16xf32> to vector<8x16x16xf32>
    %28 = vector.shape_cast %27 : vector<8x16x16xf32> to vector<128x16xf32>
    %29 = arith.truncf %28 : vector<128x16xf32> to vector<128x16xbf16>
    %c0_14 = arith.constant 0 : index
    %c0_15 = arith.constant 0 : index
    %30 = vector.load %arg5[%c0_14, %c0_15] : memref<16x4xbf16, #tpu.memory_space<vmem>>, vector<16x4xbf16>
    %cst_16 = arith.constant dense<0.000000e+00> : vector<128x4xf32>
    %31 = tpu.matmul %29, %30, %cst_16 {dimension_numbers = #tpu.dot_dimension_numbers<[1], [0], [0], [1], [0, 0, 1, 1], [], []>} : vector<128x16xbf16>, vector<16x4xbf16>, vector<128x4xf32> -> vector<128x4xf32>
    %c0_17 = arith.constant 0 : index
    %c0_18 = arith.constant 0 : index
    %32 = vector.load %arg8[%c0_17, %c0_18] : memref<1x4xf32, #tpu.memory_space<vmem>>, vector<1x4xf32>
    %33 = vector.broadcast %32 : vector<1x4xf32> to vector<128x4xf32>
    %34 = arith.mulf %31, %33 : vector<128x4xf32>
    %c0_19 = arith.constant 0 : index
    %c0_20 = arith.constant 0 : index
    %35 = vector.load %arg9[%c0_19, %c0_20] : memref<1x4xf32, #tpu.memory_space<vmem>>, vector<1x4xf32>
    %36 = vector.broadcast %35 : vector<1x4xf32> to vector<128x4xf32>
    %37 = arith.addf %34, %36 : vector<128x4xf32>
    %cst_21 = arith.constant 0.000000e+00 : f32
    %38 = vector.broadcast %cst_21 : f32 to vector<128x4xf32>
    %39 = arith.maximumf %37, %38 : vector<128x4xf32>
    %40 = arith.truncf %39 : vector<128x4xf32> to vector<128x4xbf16>
    %41 = vector.shape_cast %40 : vector<128x4xbf16> to vector<8x16x4xbf16>
    %c0_22 = arith.constant 0 : index
    %c0_23 = arith.constant 0 : index
    %c0_24 = arith.constant 0 : index
    %c0_25 = arith.constant 0 : index
    %42 = vector.load %arg4[%c0_22, %c0_23, %c0_24, %c0_25] : memref<1x1x16x16xf32, #tpu.memory_space<vmem>>, vector<1x1x16x16xf32>
    %43 = vector.shape_cast %42 : vector<1x1x16x16xf32> to vector<1x16x16xf32>
    %44 = vector.shape_cast %43 : vector<1x16x16xf32> to vector<16x16xf32>
    %45 = arith.truncf %44 : vector<16x16xf32> to vector<16x16xbf16>
    %c0_26 = arith.constant 0 : index
    %c0_27 = arith.constant 0 : index
    %46 = vector.load %arg5[%c0_26, %c0_27] : memref<16x4xbf16, #tpu.memory_space<vmem>>, vector<16x4xbf16>
    %cst_28 = arith.constant dense<0.000000e+00> : vector<16x4xf32>
    %47 = tpu.matmul %45, %46, %cst_28 {dimension_numbers = #tpu.dot_dimension_numbers<[1], [0], [0], [1], [0, 0, 1, 1], [], []>} : vector<16x16xbf16>, vector<16x4xbf16>, vector<16x4xf32> -> vector<16x4xf32>
    %c0_29 = arith.constant 0 : index
    %c0_30 = arith.constant 0 : index
    %48 = vector.load %arg8[%c0_29, %c0_30] : memref<1x4xf32, #tpu.memory_space<vmem>>, vector<1x4xf32>
    %49 = vector.broadcast %48 : vector<1x4xf32> to vector<16x4xf32>
    %50 = arith.mulf %47, %49 : vector<16x4xf32>
    %c0_31 = arith.constant 0 : index
    %c0_32 = arith.constant 0 : index
    %51 = vector.load %arg9[%c0_31, %c0_32] : memref<1x4xf32, #tpu.memory_space<vmem>>, vector<1x4xf32>
    %52 = vector.broadcast %51 : vector<1x4xf32> to vector<16x4xf32>
    %53 = arith.addf %50, %52 : vector<16x4xf32>
    %cst_33 = arith.constant 0.000000e+00 : f32
    %54 = vector.broadcast %cst_33 : f32 to vector<16x4xf32>
    %55 = arith.maximumf %53, %54 : vector<16x4xf32>
    %56 = arith.truncf %55 : vector<16x4xf32> to vector<16x4xbf16>
    %57 = vector.shape_cast %56 : vector<16x4xbf16> to vector<1x16x4xbf16>
    %58 = vector.broadcast %7 : bf16 to vector<1x16x4xbf16>
    %59 = arith.mulf %57, %58 : vector<1x16x4xbf16>
    %60 = tpu.concatenate %25, %41, %59 in 0 : vector<1x16x4xbf16>, vector<8x16x4xbf16>, vector<1x16x4xbf16> -> vector<10x16x4xbf16>
    %cst_34 = arith.constant 0.000000e+00 : bf16
    %61 = vector.broadcast %cst_34 : bf16 to vector<10x1x4xbf16>
    %62 = vector.extract_strided_slice %60 {offsets = [0, 0, 0], sizes = [10, 15, 4], strides = [1, 1, 1]} : vector<10x16x4xbf16> to vector<10x15x4xbf16>
    %63 = tpu.concatenate %61, %62 in 1 : vector<10x1x4xbf16>, vector<10x15x4xbf16> -> vector<10x16x4xbf16>
    %64 = vector.extract_strided_slice %60 {offsets = [0, 1, 0], sizes = [10, 15, 4], strides = [1, 1, 1]} : vector<10x16x4xbf16> to vector<10x15x4xbf16>
    %65 = tpu.concatenate %64, %61 in 1 : vector<10x15x4xbf16>, vector<10x1x4xbf16> -> vector<10x16x4xbf16>
    %66 = vector.extract_strided_slice %63 {offsets = [0, 0, 0], sizes = [8, 16, 4], strides = [1, 1, 1]} : vector<10x16x4xbf16> to vector<8x16x4xbf16>
    %67 = vector.extract_strided_slice %60 {offsets = [0, 0, 0], sizes = [8, 16, 4], strides = [1, 1, 1]} : vector<10x16x4xbf16> to vector<8x16x4xbf16>
    %68 = vector.extract_strided_slice %65 {offsets = [0, 0, 0], sizes = [8, 16, 4], strides = [1, 1, 1]} : vector<10x16x4xbf16> to vector<8x16x4xbf16>
    %69 = tpu.concatenate %66, %67, %68 in 2 : vector<8x16x4xbf16>, vector<8x16x4xbf16>, vector<8x16x4xbf16> -> vector<8x16x12xbf16>
    %70 = vector.shape_cast %69 : vector<8x16x12xbf16> to vector<128x12xbf16>
    %c0_35 = arith.constant 0 : index
    %c0_36 = arith.constant 0 : index
    %c0_37 = arith.constant 0 : index
    %71 = vector.load %arg6[%c0_35, %c0_36, %c0_37] : memref<3x12x4xbf16, #tpu.memory_space<vmem>>, vector<1x12x4xbf16>
    %72 = vector.shape_cast %71 : vector<1x12x4xbf16> to vector<12x4xbf16>
    %cst_38 = arith.constant dense<0.000000e+00> : vector<128x4xf32>
    %73 = tpu.matmul %70, %72, %cst_38 {dimension_numbers = #tpu.dot_dimension_numbers<[1], [0], [0], [1], [0, 0, 1, 1], [], []>} : vector<128x12xbf16>, vector<12x4xbf16>, vector<128x4xf32> -> vector<128x4xf32>
    %74 = vector.extract_strided_slice %63 {offsets = [1, 0, 0], sizes = [8, 16, 4], strides = [1, 1, 1]} : vector<10x16x4xbf16> to vector<8x16x4xbf16>
    %75 = vector.extract_strided_slice %60 {offsets = [1, 0, 0], sizes = [8, 16, 4], strides = [1, 1, 1]} : vector<10x16x4xbf16> to vector<8x16x4xbf16>
    %76 = vector.extract_strided_slice %65 {offsets = [1, 0, 0], sizes = [8, 16, 4], strides = [1, 1, 1]} : vector<10x16x4xbf16> to vector<8x16x4xbf16>
    %77 = tpu.concatenate %74, %75, %76 in 2 : vector<8x16x4xbf16>, vector<8x16x4xbf16>, vector<8x16x4xbf16> -> vector<8x16x12xbf16>
    %78 = vector.shape_cast %77 : vector<8x16x12xbf16> to vector<128x12xbf16>
    %c1 = arith.constant 1 : index
    %c0_39 = arith.constant 0 : index
    %c0_40 = arith.constant 0 : index
    %79 = vector.load %arg6[%c1, %c0_39, %c0_40] : memref<3x12x4xbf16, #tpu.memory_space<vmem>>, vector<1x12x4xbf16>
    %80 = vector.shape_cast %79 : vector<1x12x4xbf16> to vector<12x4xbf16>
    %cst_41 = arith.constant dense<0.000000e+00> : vector<128x4xf32>
    %81 = tpu.matmul %78, %80, %cst_41 {dimension_numbers = #tpu.dot_dimension_numbers<[1], [0], [0], [1], [0, 0, 1, 1], [], []>} : vector<128x12xbf16>, vector<12x4xbf16>, vector<128x4xf32> -> vector<128x4xf32>
    %82 = arith.addf %73, %81 : vector<128x4xf32>
    %83 = vector.extract_strided_slice %63 {offsets = [2, 0, 0], sizes = [8, 16, 4], strides = [1, 1, 1]} : vector<10x16x4xbf16> to vector<8x16x4xbf16>
    %84 = vector.extract_strided_slice %60 {offsets = [2, 0, 0], sizes = [8, 16, 4], strides = [1, 1, 1]} : vector<10x16x4xbf16> to vector<8x16x4xbf16>
    %85 = vector.extract_strided_slice %65 {offsets = [2, 0, 0], sizes = [8, 16, 4], strides = [1, 1, 1]} : vector<10x16x4xbf16> to vector<8x16x4xbf16>
    %86 = tpu.concatenate %83, %84, %85 in 2 : vector<8x16x4xbf16>, vector<8x16x4xbf16>, vector<8x16x4xbf16> -> vector<8x16x12xbf16>
    %87 = vector.shape_cast %86 : vector<8x16x12xbf16> to vector<128x12xbf16>
    %c2 = arith.constant 2 : index
    %c0_42 = arith.constant 0 : index
    %c0_43 = arith.constant 0 : index
    %88 = vector.load %arg6[%c2, %c0_42, %c0_43] : memref<3x12x4xbf16, #tpu.memory_space<vmem>>, vector<1x12x4xbf16>
    %89 = vector.shape_cast %88 : vector<1x12x4xbf16> to vector<12x4xbf16>
    %cst_44 = arith.constant dense<0.000000e+00> : vector<128x4xf32>
    %90 = tpu.matmul %87, %89, %cst_44 {dimension_numbers = #tpu.dot_dimension_numbers<[1], [0], [0], [1], [0, 0, 1, 1], [], []>} : vector<128x12xbf16>, vector<12x4xbf16>, vector<128x4xf32> -> vector<128x4xf32>
    %91 = arith.addf %82, %90 : vector<128x4xf32>
    %c0_45 = arith.constant 0 : index
    %c0_46 = arith.constant 0 : index
    %92 = vector.load %arg10[%c0_45, %c0_46] : memref<1x4xf32, #tpu.memory_space<vmem>>, vector<1x4xf32>
    %93 = vector.broadcast %92 : vector<1x4xf32> to vector<128x4xf32>
    %94 = arith.mulf %91, %93 : vector<128x4xf32>
    %c0_47 = arith.constant 0 : index
    %c0_48 = arith.constant 0 : index
    %95 = vector.load %arg11[%c0_47, %c0_48] : memref<1x4xf32, #tpu.memory_space<vmem>>, vector<1x4xf32>
    %96 = vector.broadcast %95 : vector<1x4xf32> to vector<128x4xf32>
    %97 = arith.addf %94, %96 : vector<128x4xf32>
    %cst_49 = arith.constant 0.000000e+00 : f32
    %98 = vector.broadcast %cst_49 : f32 to vector<128x4xf32>
    %99 = arith.maximumf %97, %98 : vector<128x4xf32>
    %100 = arith.truncf %99 : vector<128x4xf32> to vector<128x4xbf16>
    %c0_50 = arith.constant 0 : index
    %c0_51 = arith.constant 0 : index
    %101 = vector.load %arg7[%c0_50, %c0_51] : memref<4x16xbf16, #tpu.memory_space<vmem>>, vector<4x16xbf16>
    %cst_52 = arith.constant dense<0.000000e+00> : vector<128x16xf32>
    %102 = tpu.matmul %100, %101, %cst_52 {dimension_numbers = #tpu.dot_dimension_numbers<[1], [0], [0], [1], [0, 0, 1, 1], [], []>} : vector<128x4xbf16>, vector<4x16xbf16>, vector<128x16xf32> -> vector<128x16xf32>
    %c0_53 = arith.constant 0 : index
    %c0_54 = arith.constant 0 : index
    %103 = vector.load %arg12[%c0_53, %c0_54] : memref<1x16xf32, #tpu.memory_space<vmem>>, vector<1x16xf32>
    %104 = vector.broadcast %103 : vector<1x16xf32> to vector<128x16xf32>
    %105 = arith.mulf %102, %104 : vector<128x16xf32>
    %c0_55 = arith.constant 0 : index
    %c0_56 = arith.constant 0 : index
    %106 = vector.load %arg13[%c0_55, %c0_56] : memref<1x16xf32, #tpu.memory_space<vmem>>, vector<1x16xf32>
    %107 = vector.broadcast %106 : vector<1x16xf32> to vector<128x16xf32>
    %108 = arith.addf %105, %107 : vector<128x16xf32>
    %c0_57 = arith.constant 0 : index
    %c0_58 = arith.constant 0 : index
    %c0_59 = arith.constant 0 : index
    %c0_60 = arith.constant 0 : index
    %109 = vector.load %arg2[%c0_57, %c0_58, %c0_59, %c0_60] : memref<1x8x16x16xf32, #tpu.memory_space<vmem>>, vector<1x8x16x16xf32>
    %110 = vector.shape_cast %109 : vector<1x8x16x16xf32> to vector<8x16x16xf32>
    %111 = vector.shape_cast %110 : vector<8x16x16xf32> to vector<128x16xf32>
    %112 = arith.addf %108, %111 : vector<128x16xf32>
    %cst_61 = arith.constant 0.000000e+00 : f32
    %113 = vector.broadcast %cst_61 : f32 to vector<128x16xf32>
    %114 = arith.maximumf %112, %113 : vector<128x16xf32>
    %115 = vector.shape_cast %114 : vector<128x16xf32> to vector<1x8x16x16xf32>
    %c0_62 = arith.constant 0 : index
    %c0_63 = arith.constant 0 : index
    %c0_64 = arith.constant 0 : index
    %c0_65 = arith.constant 0 : index
    %116 = vector.load %arg14[%c0_62, %c0_63, %c0_64, %c0_65] : memref<1x8x16x16xf32, #tpu.memory_space<vmem>>, vector<1x8x16x16xf32>
    tpu.vector_store %arg14[%c0_62, %c0_63, %c0_64, %c0_65], %115 {strides = array<i32>} : memref<1x8x16x16xf32, #tpu.memory_space<vmem>>, vector<1x8x16x16xf32>,
    return
  }
  func.func @transform_0(%arg0: i32, %arg1: i32) -> (i32, i32, i32, i32) {
    %c0_i32 = arith.constant 0 : i32
    %c0_i32_0 = arith.constant 0 : i32
    %c0_i32_1 = arith.constant 0 : i32
    return %arg0, %arg1, %c0_i32, %c0_i32_0 : i32, i32, i32, i32
  }
  func.func @transform_1(%arg0: i32, %arg1: i32) -> (i32, i32, i32, i32) {
    %c8_i32 = arith.constant 8 : i32
    %0 = arith.muli %arg1, %c8_i32 : i32
    %c1_i32 = arith.constant 1 : i32
    %1 = arith.subi %0, %c1_i32 : i32
    %c0_i32 = arith.constant 0 : i32
    %2 = arith.maxsi %1, %c0_i32 : i32
    %c0_i32_0 = arith.constant 0 : i32
    %c0_i32_1 = arith.constant 0 : i32
    %c0_i32_2 = arith.constant 0 : i32
    return %arg0, %2, %c0_i32_0, %c0_i32_1 : i32, i32, i32, i32
  }
  func.func @transform_2(%arg0: i32, %arg1: i32) -> (i32, i32, i32, i32) {
    %c1_i32 = arith.constant 1 : i32
    %0 = arith.addi %arg1, %c1_i32 : i32
    %c8_i32 = arith.constant 8 : i32
    %1 = arith.muli %0, %c8_i32 : i32
    %c15_i32 = arith.constant 15 : i32
    %2 = arith.minsi %1, %c15_i32 : i32
    %c0_i32 = arith.constant 0 : i32
    %c0_i32_0 = arith.constant 0 : i32
    %c0_i32_1 = arith.constant 0 : i32
    return %arg0, %2, %c0_i32, %c0_i32_0 : i32, i32, i32, i32
  }
  func.func @transform_3(%arg0: i32, %arg1: i32) -> (i32, i32) {
    %c0_i32 = arith.constant 0 : i32
    %c0_i32_0 = arith.constant 0 : i32
    %c0_i32_1 = arith.constant 0 : i32
    return %c0_i32, %c0_i32_0 : i32, i32
  }
  func.func @transform_4(%arg0: i32, %arg1: i32) -> (i32, i32, i32) {
    %c0_i32 = arith.constant 0 : i32
    %c0_i32_0 = arith.constant 0 : i32
    %c0_i32_1 = arith.constant 0 : i32
    %c0_i32_2 = arith.constant 0 : i32
    return %c0_i32, %c0_i32_0, %c0_i32_1 : i32, i32, i32
  }
  func.func @transform_5(%arg0: i32, %arg1: i32) -> (i32, i32) {
    %c0_i32 = arith.constant 0 : i32
    %c0_i32_0 = arith.constant 0 : i32
    %c0_i32_1 = arith.constant 0 : i32
    return %c0_i32, %c0_i32_0 : i32, i32
  }
  func.func @transform_6(%arg0: i32, %arg1: i32) -> (i32, i32) {
    %c0_i32 = arith.constant 0 : i32
    %c0_i32_0 = arith.constant 0 : i32
    %c0_i32_1 = arith.constant 0 : i32
    return %c0_i32, %c0_i32_0 : i32, i32
  }
  func.func @transform_7(%arg0: i32, %arg1: i32) -> (i32, i32) {
    %c0_i32 = arith.constant 0 : i32
    %c0_i32_0 = arith.constant 0 : i32
    %c0_i32_1 = arith.constant 0 : i32
    return %c0_i32, %c0_i32_0 : i32, i32
  }
  func.func @transform_8(%arg0: i32, %arg1: i32) -> (i32, i32) {
    %c0_i32 = arith.constant 0 : i32
    %c0_i32_0 = arith.constant 0 : i32
    %c0_i32_1 = arith.constant 0 : i32
    return %c0_i32, %c0_i32_0 : i32, i32
  }
  func.func @transform_9(%arg0: i32, %arg1: i32) -> (i32, i32) {
    %c0_i32 = arith.constant 0 : i32
    %c0_i32_0 = arith.constant 0 : i32
    %c0_i32_1 = arith.constant 0 : i32
    return %c0_i32, %c0_i32_0 : i32, i32
  }
  func.func @transform_10(%arg0: i32, %arg1: i32) -> (i32, i32) {
    %c0_i32 = arith.constant 0 : i32
    %c0_i32_0 = arith.constant 0 : i32
    %c0_i32_1 = arith.constant 0 : i32
    return %c0_i32, %c0_i32_0 : i32, i32
  }
  func.func @transform_11(%arg0: i32, %arg1: i32) -> (i32, i32) {
    %c0_i32 = arith.constant 0 : i32
    %c0_i32_0 = arith.constant 0 : i32
    %c0_i32_1 = arith.constant 0 : i32
    return %c0_i32, %c0_i32_0 : i32, i32
  }
  func.func @transform_12(%arg0: i32, %arg1: i32) -> (i32, i32, i32, i32) {
    %c0_i32 = arith.constant 0 : i32
    %c0_i32_0 = arith.constant 0 : i32
    %c0_i32_1 = arith.constant 0 : i32
    return %arg0, %arg1, %c0_i32, %c0_i32_0 : i32, i32, i32, i32
  }
}

</mosaic_0001>

<bundles_post_ra>
// kernel: tpu_custom_call.1
= control target key start
LH: loop header
LB: loop body
LE: loop exit
PB: predicated region body
PF: predicated region fallthrough
CT: control target
= control target key end

     0   :  { %s4513_s0 = inlined_call_operand.hbm [shape: f32[2,16,16,16], index: 0, kind: input, shape index: {}]   ;;  %s4514_s1 = inlined_call_operand.hbm [shape: f32[2,16,16,16], index: 1, kind: input, shape index: {}]   ;;  %s4515_s2 = inlined_call_operand.hbm [shape: f32[2,16,16,16], index: 2, kind: input, shape index: {}]   ;;  %s4516_s3 = inlined_call_operand.hbm [shape: bf16[16,4], index: 3, kind: input, shape index: {}]   ;;  %s4517_s4 = inlined_call_operand.hbm [shape: bf16[3,12,4], index: 4, kind: input, shape index: {}]   ;;  %s4518_s5 = inlined_call_operand.hbm [shape: bf16[4,16], index: 5, kind: input, shape index: {}]   ;;  %s4519_s6 = inlined_call_operand.hbm [shape: f32[1,4], index: 6, kind: input, shape index: {}]   ;;  %s4520_s7 = inlined_call_operand.hbm [shape: f32[1,4], index: 7, kind: input, shape index: {}]   ;;  %s4521_s8 = inlined_call_operand.hbm [shape: f32[1,4], index: 8, kind: input, shape index: {}]   ;;  %s4522_s9 = inlined_call_operand.hbm [shape: f32[1,4], index: 9, kind: input, shape index: {}]   ;;  %s4523_s10 = inlined_call_operand.hbm [shape: f32[1,16], index: 10, kind: input, shape index: {}]   ;;  %s4524_s11 = inlined_call_operand.hbm [shape: f32[1,16], index: 11, kind: input, shape index: {}]   ;;  %s4525_s12 = inlined_call_operand.hbm [shape: f32[2,16,16,16], index: 12, kind: output, shape index: {}]  }
   0x1   :  { %4560 = sst [smem:[#allocation46_spill]] %s4513_s0 }
   0x2   :  { %4561 = sst [smem:[#allocation47_spill]] %s4514_s1 }
   0x3   :  { %4562 = sst [smem:[#allocation48_spill]] %s4515_s2 }
   0x4   :  { %4563 = sst [smem:[#allocation49_spill]] %s4516_s3 }
   0x5   :  { %4564 = sst [smem:[#allocation50_spill]] %s4517_s4 }
   0x6   :  { %4565 = sst [smem:[#allocation51_spill]] %s4518_s5 }
   0x7   :  { %4566 = sst [smem:[#allocation52_spill]] %s4519_s6 }
   0x8   :  { %4567 = sst [smem:[#allocation53_spill]] %s4520_s7 }
   0x9   :  { %4568 = sst [smem:[#allocation54_spill]] %s4521_s8 }
   0xa   :  { %4569 = sst [smem:[#allocation55_spill]] %s4522_s9 }
   0xb   :  { %4570 = sst [smem:[#allocation56_spill]] %s4523_s10 }
   0xc   :  { %4571 = sst [smem:[#allocation57_spill]] %s4524_s11 }
   0xd   :  { %4572 = sst [smem:[#allocation58_spill]] %s4525_s12 }
   0xe   :  { %17 = vsyncpa [#allocation3], 0 }
   0xf   :  { %19 = vsyncpa [#allocation3 + $0x1], 0 }
  0x10   :  { %20 = vsyncpa [#allocation6], 0 }
  0x11   :  { %22 = vsyncpa [#allocation6 + $0x1], 0 }
  0x12   :  { %23 = vsyncpa [#allocation9], 0 }
  0x13   :  { %24 = vsyncpa [#allocation12], 0 }
  0x14   :  { %25 = vsyncpa [#allocation15], 0 }
  0x15   :  { %26 = vsyncpa [#allocation18], 0 }
  0x16   :  { %27 = vsyncpa [#allocation21], 0 }
  0x17   :  { %28 = vsyncpa [#allocation4], 0 }
  0x18   :  { %30 = vsyncpa [#allocation4 + $0x1], 0  ;;  %s3354_s21 = smov 0   ;;  %s3356_s22 = smov 0  }
  0x19   :  { %s3358_s23 = smov 0   ;;  %s3360_s24 = smov 0  }
  0x1a   :  { %s3362_s25 = smov 0   ;;  %s3364_s26 = smov 0  }
  0x1b   :  { %s3366_s27 = smov 0   ;;  %s3368_s28 = smov 0  }
  0x1c   :  { %s3370_s29 = smov 0   ;;  %s3372_s30 = smov 0  }
  0x1d   :  { %s3374_s13 = smov 0   ;;  %s3376_s14 = smov 0  }
  0x1e   :  { %s3378_s15 = smov 0   ;;  %s3380_s16 = smov 0  }
  0x1f LB: > { %4573 = sst [smem:[#allocation32_spill]] %s3213_s21  ;;  %s3425_s17 = sadd.s32 4294967295, %s3265_s16   ;;  %s3265_s16 = sphi %s3380_s16, %s36_s16   ;;  %s3261_s15 = sphi %s3378_s15, %s4671_s15   ;;  %s3257_s14 = sphi %s3376_s14, %s4679_s14   ;;  %s3253_s13 = sphi %s3374_s13, %s4678_s13   ;;  %s3249_s30 = sphi %s3372_s30, %s4677_s30   ;;  %s3245_s29 = sphi %s3370_s29, %s4676_s29   ;;  %s3241_s28 = sphi %s3368_s28, %s4668_s28   ;;  %s3237_s27 = sphi %s3366_s27, %s4667_s27   ;;  %s3233_s26 = sphi %s3364_s26, %s4675_s26   ;;  %s3229_s25 = sphi %s3362_s25, %s4674_s25   ;;  %s3225_s24 = sphi %s3360_s24, %s4673_s24   ;;  %s3221_s23 = sphi %s3358_s23, %s4672_s23   ;;  %s3217_s22 = sphi %s3356_s22, %s4664_s22   ;;  %s3213_s21 = sphi %s3354_s21, %s4663_s21  }
  0x20   : > { %4574 = sst [smem:[#allocation33_spill]] %s3217_s22  ;;  %p2205_p0 = scmp.ge.s32.totalorder %s3265_s16, 1 }
  0x21   : > { %4575 = sst [smem:[#allocation34_spill]] %s3221_s23  ;;  %p4537_p1 = scmp.eq.s32.totalorder %s3425_s17, 0 }
  0x22   : > { %4576 = sst [smem:[#allocation35_spill]] %s3229_s25  ;;  %p370_p2 = scmp.lt.s32.totalorder %s3265_s16, 5 }
  0x23   : > { %4577 = sst [smem:[#allocation36_spill]] %s3237_s27  ;;  %s3267_s19 = smov [#allocation8]  }
  0x24   : > { %4578 = sst [smem:[#allocation37_spill]] %s3241_s28  ;;  %p3430_p3 = pnand %p2205_p0, %p370_p2 }
  0x25   : > { %4579 = sst [smem:[#allocation38_spill]] %s3245_s29  ;;  %s382_s20 = sshll.u32 %s3267_s19, 4  ;;  %s3434_s20 = int_to_ptr.vmem [resolvable:$true] %s382_s20 }
  0x26   : > { %4580 = sst [smem:[#allocation39_spill]] %s3249_s30  ;;  %p2547_p4 = pneg %p3430_p3 }
  0x27   : > { %4581 = sst [smem:[#allocation40_spill]] %s3253_s13  ;;  %s3268_s13 = smov [#allocation11]  }
  0x28   : > { %4582 = sst [smem:[#allocation41_spill]] %s3261_s15  ;;  %p3440_p5 = pnand %p2547_p4, %p4537_p1 }
  0x29   : > { %s4583_s18 = scalar_select %p3430_p3, 1, 0 }
  0x2a   : > { %s4585_s12 = scalar_select %p3440_p5, 1, 0 }
  0x2b   : > { %4584 = sst [smem:[#allocation42_spill]] %s4583_s18  ;;  %s409_s30 = sshll.u32 %s3268_s13, 4  ;;  %s3444_s30 = int_to_ptr.vmem [resolvable:$true] %s409_s30 }
  0x2c   : > { %s3269_s2 = smov [#allocation14]   ;;  %s4586_s3 = sld [smem:[#allocation49_spill]] }
  0x2d   : > { %s3446_s21 = sshll.u32 %s3269_s2, 4  ;;  %p3456_p7 = pneg %p3440_p5  ;;  %s432_s21 = int_to_ptr.vmem [resolvable:$true] %s3446_s21 }
  0x32   : > { %s2749_s19 = scalar_lea.hbm %s4586_s3, 128 }
  0x33   : > { %p2750_p6 = scmp.ne.s32.totalorder %s4586_s3, %s2749_s19  ;;  %p2756_p10 = scmp.lt.u32.totalorder %s2749_s19, %s4586_s3 }
  0x35   : > { %p2752_p8 = pnand %p3456_p7, %p2750_p6 }
  0x37   : > { %p2753_p9 = pneg %p2752_p8 }
  0x39   : > { %p2758_p11 = pnand %p2756_p10, %p2753_p9 }
  0x3b   : > { %2761 = shalt.err (!%p2758_p11)
}
  0x3c   : > { %s2762_s0 = scalar_lea.vmem %s3434_s20, 128  ;;  %p2770_p2 = scmp.lt.s32.totalorder %s3434_s20, %s3434_s20 }
  0x3d   : > { %p2763_p12 = scmp.ne.s32.totalorder %s3434_s20, %s2762_s0  ;;  %p2771_p4 = scmp.lt.s32.totalorder %s2762_s0, %s2762_s0 }
  0x3f   : > { %p2765_p13 = pnand %p2763_p12, %p3456_p7  ;;  %p2772_p6 = por %p2771_p4, %p2770_p2 }
  0x41   : > { %p2766_p0 = pneg %p2765_p13 }
  0x43   : > { %p2773_p8 = pnand %p2772_p6, %p2766_p0 }
  0x45   : > { %2776 = shalt.err (!%p2773_p8)
}
  0x46   : > { %s4539_s22 = smov 64   ;;  %s4540_s23 = smov 4  }
  0x47   : > { %2550 = dma.hbm_to_vmem [thread:$0]  (!%p3440_p5), %s4586_s3, 128, %s3434_s20, [#allocation9], %s4539_s22, %s4539_s22, %s4540_s23  }
  0x48   : > { %s4588_s5 = sld [smem:[#allocation51_spill]] }
  0x4e   : > { %s2777_s0 = scalar_lea.hbm %s4588_s5, 32 }
  0x4f   : > { %p2778_p9 = scmp.ne.s32.totalorder %s4588_s5, %s2777_s0  ;;  %p2784_p12 = scmp.lt.u32.totalorder %s2777_s0, %s4588_s5 }
  0x51   : > { %p2780_p10 = pnand %p2778_p9, %p3456_p7 }
  0x53   : > { %p2781_p11 = pneg %p2780_p10 }
  0x55   : > { %p2786_p13 = pnand %p2784_p12, %p2781_p11 }
  0x57   : > { %2789 = shalt.err (!%p2786_p13)
}
  0x58   : > { %s2790_s20 = scalar_lea.vmem %s3444_s30, 32  ;;  %p2798_p6 = scmp.lt.s32.totalorder %s3444_s30, %s3444_s30 }
  0x59   : > { %p2791_p0 = scmp.ne.s32.totalorder %s3444_s30, %s2790_s20  ;;  %p2799_p8 = scmp.lt.s32.totalorder %s2790_s20, %s2790_s20 }
  0x5b   : > { %p2793_p2 = pnand %p2791_p0, %p3456_p7  ;;  %p2800_p9 = por %p2799_p8, %p2798_p6 }
  0x5d   : > { %p2794_p4 = pneg %p2793_p2 }
  0x5f   : > { %p2801_p10 = pnand %p2800_p9, %p2794_p4 }
  0x61   : > { %2804 = shalt.err (!%p2801_p10)
}
  0x62   : > { %2556 = dma.hbm_to_vmem [thread:$0]  (!%p3440_p5), %s4588_s5, 32, %s3444_s30, [#allocation12]  }
  0x63   : > { %s4589_s7 = sld [smem:[#allocation53_spill]] }
  0x69   : > { %s2805_s18 = scalar_lea.hbm %s4589_s7, 16 }
  0x6a   : > { %p2806_p11 = scmp.ne.s32.totalorder %s4589_s7, %s2805_s18  ;;  %p2812_p0 = scmp.lt.u32.totalorder %s2805_s18, %s4589_s7 }
  0x6c   : > { %p2808_p12 = pnand %p2806_p11, %p3456_p7 }
  0x6e   : > { %p2809_p13 = pneg %p2808_p12 }
  0x70   : > { %p2814_p2 = pnand %p2812_p0, %p2809_p13 }
  0x72   : > { %2817 = shalt.err (!%p2814_p2)
}
  0x73   : > { %s2818_s20 = scalar_lea.vmem %s432_s21, 16  ;;  %s2825_s30 = scalar_lea.vmem %s432_s21, 32 }
  0x74   : > { %p2819_p4 = scmp.ne.s32.totalorder %s432_s21, %s2818_s20  ;;  %p2826_p9 = scmp.lt.s32.totalorder %s432_s21, %s432_s21 }
  0x75   : > { %p2827_p10 = scmp.lt.s32.totalorder %s2825_s30, %s2818_s20 }
  0x76   : > { %p2821_p6 = pnand %p2819_p4, %p3456_p7 }
  0x77   : > { %p2828_p1 = por %p2827_p10, %p2826_p9 }
  0x78   : > { %p2822_p8 = pneg %p2821_p6 }
  0x7a   : > { %p2829_p3 = pnand %p2828_p1, %p2822_p8 }
  0x7c   : > { %2832 = shalt.err (!%p2829_p3)
}
  0x7d   : > { %2562 = dma.hbm_to_vmem [thread:$0]  (!%p3440_p5), %s4589_s7, 16, %s432_s21, [#allocation15]  }
  0x7e   : > { %s3272_s28 = smov [#allocation17]   ;;  %s4590_s9 = sld [smem:[#allocation55_spill]] }
  0x7f   : > { %s453_s29 = sshll.u32 %s3272_s28, 4  ;;  %s454_s29 = int_to_ptr.vmem [resolvable:$true] %s453_s29 }
  0x84   : > { %s2833_s13 = scalar_lea.hbm %s4590_s9, 16 }
  0x85   : > { %p2834_p11 = scmp.ne.s32.totalorder %s4590_s9, %s2833_s13  ;;  %p2840_p12 = scmp.lt.u32.totalorder %s2833_s13, %s4590_s9 }
  0x87   : > { %p2836_p1 = pnand %p2834_p11, %p3456_p7 }
  0x89   : > { %p2837_p3 = pneg %p2836_p1 }
  0x8b   : > { %p2842_p13 = pnand %p2840_p12, %p2837_p3 }
  0x8d   : > { %2845 = shalt.err (!%p2842_p13)
}
  0x8e   : > { %s2846_s21 = scalar_lea.vmem %s454_s29, 16  ;;  %s2853_s10 = scalar_lea.vmem %s454_s29, 32 }
  0x8f   : > { %p2847_p0 = scmp.ne.s32.totalorder %s454_s29, %s2846_s21  ;;  %p2854_p6 = scmp.lt.s32.totalorder %s454_s29, %s454_s29 }
  0x90   : > { %p2855_p8 = scmp.lt.s32.totalorder %s2853_s10, %s2846_s21 }
  0x91   : > { %p2849_p2 = pnand %p2847_p0, %p3456_p7 }
  0x92   : > { %p2856_p9 = por %p2855_p8, %p2854_p6 }
  0x93   : > { %p2850_p4 = pneg %p2849_p2 }
  0x95   : > { %p2857_p10 = pnand %p2856_p9, %p2850_p4 }
  0x97   : > { %2860 = shalt.err (!%p2857_p10)
}
  0x98   : > { %2568 = dma.hbm_to_vmem [thread:$0]  (!%p3440_p5), %s4590_s9, 16, %s454_s29, [#allocation18]  }
  0x99   : > { %s45_s18 = sadd.s32 1, %s3257_s14  ;;  %s48_s19 = sadd.s32 1, %s3261_s15 }
  0x9a   : > { %p46_p11 = scmp.ge.s32.totalorder %s45_s18, 2  ;;  %p4547_p1 = scmp.eq.s32.totalorder %s3265_s16, 0 }
  0x9b   : > { %s2199_s13 = sshll.u32 %s3257_s14, 3  ;;  %s93_s2 = sadd.s32 1, %s3233_s26 }
  0x9c   : > { %s4681_s18 = smov (%p46_p11, %s45_s18), 0  ;;  %s4683_s19 = smov (!%p46_p11, %s48_s19), %s3261_s15 }
  0x9d   : > { %4591 = sst [smem:[#allocation43_spill]] %s4681_s18  ;;  %s53_s0 = ssub.s32 %s3257_s14, %s4681_s18 }
  0x9e   : > { %s2200_s20 = sadd.s32 4294967295, %s2199_s13  ;;  %p50_p3 = scmp.ge.s32.totalorder %s4683_s19, 2 }
  0x9f   : > { %p82_p12 = scmp.gt.s32.totalorder %s2200_s20, 0  ;;  %s2201_s29 = sshll.u32 %s4681_s18, 3 }
  0xa0   : > { %p100_p13 = scmp.ne.s32.totalorder %s3233_s26, %s3229_s25  ;;  %s4685_s19 = smov (%p50_p3, %s4683_s19), 0 }
  0xa1   : > { %4592 = sst [smem:[#allocation44_spill]] %s4685_s19  ;;  %s4687_s20 = smov (!%p82_p12, %s2200_s20), 0 }
  0xa2   : > { %s3557_s30 = ssub.s32 %s3261_s15, %s4685_s19  ;;  %s2202_s21 = sadd.s32 4294967295, %s2201_s29 }
  0xa3   : > { %s3560_s10 = sor.u32 %s53_s0, %s3557_s30  ;;  %p86_p0 = scmp.gt.s32.totalorder %s2202_s21, 0 }
  0xa4   : > { %p3565_p4 = por %p100_p13, %p4547_p1  ;;  %p106_p6 = scmp.ne.s32.totalorder %s3229_s25, %s3225_s24 }
  0xa5   : > { %s4689_s21 = smov (!%p86_p0, %s2202_s21), 0  ;;  %s3571_s28 = sadd.s32 8, %s2199_s13 }
  0xa6   : > { %s89_s22 = ssub.s32 %s4687_s20, %s4689_s21  ;;  %p4594_p9 = scmp.eq.s32.totalorder %s3425_s17, 0 }
  0xa7   : > { %s90_s0 = sor.u32 %s89_s22, %s3557_s30  ;;  %s3581_s3 = sadd.s32 8, %s2201_s29 }
  0xa8   : > { %p3577_p10 = por %p106_p6, %p4594_p9  ;;  %p91_p11 = scmp.eq.s32.totalorder %s90_s0, 0 }
  0xa9   : > { %p4546_p12 = scmp.lt.s32.totalorder %s3265_s16, 4  ;;  %s3589_s13 = sshll.u32 %s3261_s15, 5 }
  0xaa   : > { %s4595_s23 = scalar_select %p3577_p10, 1, 0 }
  0xab   : > { %s3586_s24 = scalar_select %p91_p11, %s3233_s26, %s93_s2  }
  0xac   : > { %4596 = sst [smem:[#allocation45_spill]] %s4595_s23  ;;  %s510_s21 = sand.u32 1, %s3265_s16  }
  0xad   : > { %s512_s22 = sand.u32 1, %s3233_s26   ;;  %s2224_s7 = sshll.u32 %s4687_s20, 1 }
  0xae   : > { %s2221_s5 = sshll.u32 %s512_s22, 4  ;;  %s524_s9 = sadd.s32 %s2224_s7, %s3589_s13 }
  0xaf   : > { %s2226_s19 = sshll.u32 %s524_s9, 7  ;;  %s514_s18 = scalar_lea.vmem [#allocation5], %s2221_s5 }
  0xb0   : > { %s527_s0 = sshll.u32 %s514_s18, 4  ;;  %s4597_s1 = sld [smem:[#allocation47_spill]]  ;;  %s3599_s0 = int_to_ptr.vmem [resolvable:$true] %s527_s0 }
  0xb1   : > { %p3605_p13 = pnand %p4546_p12, %p3565_p4  ;;  %s3273_s5 = smov [#allocation10]  }
  0xb2   : > { %s395_s7 = sshll.u32 %s3273_s5, 4  ;;  %s3611_s9 = scalar_lea.sflag [#allocation6], %s510_s21  ;;  %s3609_s7 = int_to_ptr.vmem [resolvable:$true] %s395_s7 }
  0xb3   : > { %p2863_p6 = pneg %p3605_p13 }
  0xb6   : > { %s3597_s29 = scalar_lea.hbm %s4597_s1, %s2226_s19  ;;  %s2866_s19 = scalar_lea.hbm %s4597_s1, 8192 }
  0xb7   : > { %s2861_s25 = scalar_lea.hbm %s3597_s29, 256  ;;  %p2867_p4 = scmp.lt.u32.totalorder %s3597_s29, %s4597_s1 }
  0xb8   : > { %p2862_p0 = scmp.ne.s32.totalorder %s3597_s29, %s2861_s25  ;;  %p2868_p3 = scmp.lt.u32.totalorder %s2866_s19, %s2861_s25 }
  0xb9   : > { %p2870_p12 = scmp.lt.u32.totalorder %s2861_s25, %s3597_s29 }
  0xba   : > { %p2864_p9 = pnand %p2863_p6, %p2862_p0  ;;  %p2869_p8 = por %p2868_p3, %p2867_p4 }
  0xbc   : > { %p2865_p11 = pneg %p2864_p9  ;;  %p2871_p1 = por %p2870_p12, %p2869_p8 }
  0xbe   : > { %p2872_p2 = pnand %p2871_p1, %p2865_p11 }
  0xc0   : > { %2875 = shalt.err (!%p2872_p2)
}
  0xc1   : > { %s2876_s21 = scalar_lea.vmem %s3599_s0, 256  ;;  %s3274_s22 = smov [#allocation5]  }
  0xc2   : > { %p2877_p0 = scmp.ne.s32.totalorder %s3599_s0, %s2876_s21  ;;  %s2881_s5 = sshll.u32 %s3274_s22, 4  ;;  %s2882_s5 = int_to_ptr.vmem [resolvable:$false] %s2881_s5 }
  0xc3   : > { %s2883_s23 = scalar_lea.vmem %s2882_s5, 512  ;;  %p2884_p5 = scmp.lt.s32.totalorder %s3599_s0, %s2882_s5 }
  0xc4   : > { %p2879_p9 = pnand %p2877_p0, %p2863_p6  ;;  %p2885_p3 = scmp.lt.s32.totalorder %s2883_s23, %s2876_s21 }
  0xc6   : > { %p2880_p10 = pneg %p2879_p9  ;;  %p2886_p4 = por %p2885_p3, %p2884_p5 }
  0xc8   : > { %p2887_p8 = pnand %p2886_p4, %p2880_p10 }
  0xca   : > { %2890 = shalt.err (!%p2887_p8)
}
  0xcb   : > { %s4551_s25 = smov 128   ;;  %s4553_s18 = smov 8  }
  0xcc   : > { %2581 = dma.hbm_to_vmem [thread:$0]  (!%p3605_p13), %s3597_s29, 256, %s3599_s0, %s3611_s9, %s4551_s25, %s4551_s25, %s4553_s18  }
  0xcd   : > { %s4599_s4 = sld [smem:[#allocation50_spill]] }
  0xd3   : > { %s2891_s11 = scalar_lea.hbm %s4599_s4, 384 }
  0xd4   : > { %p2892_p5 = scmp.ne.s32.totalorder %s4599_s4, %s2891_s11  ;;  %p2898_p10 = scmp.lt.u32.totalorder %s2891_s11, %s4599_s4 }
  0xd6   : > { %p2894_p1 = pnand %p2892_p5, %p3456_p7 }
  0xd8   : > { %p2895_p2 = pneg %p2894_p1 }
  0xda   : > { %p2900_p12 = pnand %p2898_p10, %p2895_p2 }
  0xdc   : > { %2903 = shalt.err (!%p2900_p12)
}
  0xdd   : > { %s2904_s0 = scalar_lea.vmem %s3609_s7, 384  ;;  %p2912_p0 = scmp.lt.s32.totalorder %s3609_s7, %s3609_s7 }
  0xde   : > { %p2905_p13 = scmp.ne.s32.totalorder %s3609_s7, %s2904_s0  ;;  %p2913_p9 = scmp.lt.s32.totalorder %s2904_s0, %s2904_s0 }
  0xe0   : > { %p2907_p6 = pnand %p2905_p13, %p3456_p7  ;;  %p2914_p3 = por %p2913_p9, %p2912_p0 }
  0xe2   : > { %p2908_p11 = pneg %p2907_p6 }
  0xe4   : > { %p2915_p4 = pnand %p2914_p3, %p2908_p11 }
  0xe6   : > { %2918 = shalt.err (!%p2915_p4)
}
  0xe7   : > { %p4600_p8 = scmp.ne.s32.totalorder %s4585_s12, 0  ;;  %s4601_s29 = smov 4  }
  0xe8   : > { %s4602_s2 = smov 64   ;;  %s3277_s11 = smov [#allocation13]  }
  0xe9   : > { %2553 = dma.hbm_to_vmem [thread:$0]  (!%p4600_p8), %s4599_s4, 384, %s3609_s7, [#allocation9], %s4602_s2, %s4602_s2, %s4601_s29  }
  0xea   : > { %s420_s21 = sshll.u32 %s3277_s11, 4  ;;  %s3278_s22 = smov [#allocation16]   ;;  %s421_s21 = int_to_ptr.vmem [resolvable:$true] %s420_s21 }
  0xeb   : > { %s442_s5 = sshll.u32 %s3278_s22, 4  ;;  %s4603_s6 = sld [smem:[#allocation52_spill]]  ;;  %s443_s5 = int_to_ptr.vmem [resolvable:$true] %s442_s5 }
  0xf1   : > { %s2919_s25 = scalar_lea.hbm %s4603_s6, 16 }
  0xf2   : > { %p2920_p5 = scmp.ne.s32.totalorder %s4603_s6, %s2919_s25  ;;  %p2926_p10 = scmp.lt.u32.totalorder %s2919_s25, %s4603_s6 }
  0xf4   : > { %p2922_p1 = pnand %p2920_p5, %p3456_p7 }
  0xf6   : > { %p2923_p2 = pneg %p2922_p1 }
  0xf8   : > { %p2928_p12 = pnand %p2926_p10, %p2923_p2 }
  0xfa   : > { %2931 = shalt.err (!%p2928_p12)
}
  0xfb   : > { %s2932_s7 = scalar_lea.vmem %s421_s21, 16  ;;  %s2939_s29 = scalar_lea.vmem %s421_s21, 32 }
  0xfc   : > { %p2933_p13 = scmp.ne.s32.totalorder %s421_s21, %s2932_s7  ;;  %p2940_p0 = scmp.lt.s32.totalorder %s421_s21, %s421_s21 }
  0xfd   : > { %p2941_p9 = scmp.lt.s32.totalorder %s2939_s29, %s2932_s7 }
  0xfe   : > { %p2935_p6 = pnand %p2933_p13, %p3456_p7 }
  0xff   : > { %p2942_p3 = por %p2941_p9, %p2940_p0 }
 0x100   : > { %p2936_p11 = pneg %p2935_p6 }
 0x102   : > { %p2943_p4 = pnand %p2942_p3, %p2936_p11 }
 0x104   : > { %2946 = shalt.err (!%p2943_p4)
}
 0x105   : > { %2559 = dma.hbm_to_vmem [thread:$0]  (!%p4600_p8), %s4603_s6, 16, %s421_s21, [#allocation12]  }
 0x106   : > { %s4604_s8 = sld [smem:[#allocation54_spill]] }
 0x10c   : > { %s2947_s2 = scalar_lea.hbm %s4604_s8, 16 }
 0x10d   : > { %p2948_p5 = scmp.ne.s32.totalorder %s4604_s8, %s2947_s2  ;;  %p2954_p10 = scmp.lt.u32.totalorder %s2947_s2, %s4604_s8 }
 0x10f   : > { %p2950_p1 = pnand %p2948_p5, %p3456_p7 }
 0x111   : > { %p2951_p2 = pneg %p2950_p1 }
 0x113   : > { %p2956_p12 = pnand %p2954_p10, %p2951_p2 }
 0x115   : > { %2959 = shalt.err (!%p2956_p12)
}
 0x116   : > { %s2960_s0 = scalar_lea.vmem %s443_s5, 16  ;;  %s2967_s21 = scalar_lea.vmem %s443_s5, 32 }
 0x117   : > { %p2961_p13 = scmp.ne.s32.totalorder %s443_s5, %s2960_s0  ;;  %p2968_p0 = scmp.lt.s32.totalorder %s443_s5, %s443_s5 }
 0x118   : > { %p2969_p9 = scmp.lt.s32.totalorder %s2967_s21, %s2960_s0 }
 0x119   : > { %p2963_p6 = pnand %p2961_p13, %p3456_p7 }
 0x11a   : > { %p2970_p3 = por %p2969_p9, %p2968_p0 }
 0x11b   : > { %p2964_p11 = pneg %p2963_p6 }
 0x11d   : > { %p2971_p4 = pnand %p2970_p3, %p2964_p11 }
 0x11f   : > { %2974 = shalt.err (!%p2971_p4)
}
 0x120   : > { %2565 = dma.hbm_to_vmem [thread:$0]  (!%p4600_p8), %s4604_s8, 16, %s443_s5, [#allocation15]  }
 0x121   : > { %s3279_s29 = smov [#allocation19]   ;;  %s3280_s18 = smov [#allocation20]  }
 0x122   : > { %s464_s1 = sshll.u32 %s3279_s29, 4  ;;  %s475_s15 = sshll.u32 %s3280_s18, 4  ;;  %s465_s1 = int_to_ptr.vmem [resolvable:$true] %s464_s1  ;;  %s476_s15 = int_to_ptr.vmem [resolvable:$true] %s475_s15 }
 0x123   : > { %s4605_s20 = sld [smem:[#allocation56_spill]] }
 0x129   : > { %s2975_s11 = scalar_lea.hbm %s4605_s20, 16 }
 0x12a   : > { %p2976_p5 = scmp.ne.s32.totalorder %s4605_s20, %s2975_s11  ;;  %p2982_p10 = scmp.lt.u32.totalorder %s2975_s11, %s4605_s20 }
 0x12c   : > { %p2978_p1 = pnand %p2976_p5, %p3456_p7 }
 0x12e   : > { %p2979_p2 = pneg %p2978_p1 }
 0x130   : > { %p2984_p12 = pnand %p2982_p10, %p2979_p2 }
 0x132   : > { %2987 = shalt.err (!%p2984_p12)
}
 0x133   : > { %s2988_s5 = scalar_lea.vmem %s465_s1, 16  ;;  %s2995_s19 = scalar_lea.vmem %s465_s1, 32 }
 0x134   : > { %p2989_p13 = scmp.ne.s32.totalorder %s465_s1, %s2988_s5  ;;  %p2996_p0 = scmp.lt.s32.totalorder %s465_s1, %s465_s1 }
 0x135   : > { %p2997_p9 = scmp.lt.s32.totalorder %s2995_s19, %s2988_s5 }
 0x136   : > { %p2991_p6 = pnand %p2989_p13, %p3456_p7 }
 0x137   : > { %p2998_p3 = por %p2997_p9, %p2996_p0 }
 0x138   : > { %p2992_p11 = pneg %p2991_p6 }
 0x13a   : > { %p2999_p4 = pnand %p2998_p3, %p2992_p11 }
 0x13c   : > { %3002 = shalt.err (!%p2999_p4)
}
 0x13d   : > { %2571 = dma.hbm_to_vmem [thread:$0]  (!%p4600_p8), %s4605_s20, 16, %s465_s1, [#allocation18]  }
 0x13e   : > { %s4606_s2 = sld [smem:[#allocation57_spill]] }
 0x144   : > { %s3003_s11 = scalar_lea.hbm %s4606_s2, 16 }
 0x145   : > { %p3004_p5 = scmp.ne.s32.totalorder %s4606_s2, %s3003_s11  ;;  %p3010_p10 = scmp.lt.u32.totalorder %s3003_s11, %s4606_s2 }
 0x147   : > { %p3006_p1 = pnand %p3004_p5, %p3456_p7 }
 0x149   : > { %p3007_p2 = pneg %p3006_p1 }
 0x14b   : > { %p3012_p12 = pnand %p3010_p10, %p3007_p2 }
 0x14d   : > { %3015 = shalt.err (!%p3012_p12)
}
 0x14e   : > { %s3016_s5 = scalar_lea.vmem %s476_s15, 16  ;;  %s3023_s1 = scalar_lea.vmem %s476_s15, 32 }
 0x14f   : > { %p3017_p13 = scmp.ne.s32.totalorder %s476_s15, %s3016_s5  ;;  %p3024_p0 = scmp.lt.s32.totalorder %s476_s15, %s476_s15 }
 0x150   : > { %p3025_p9 = scmp.lt.s32.totalorder %s3023_s1, %s3016_s5 }
 0x151   : > { %p3019_p6 = pnand %p3017_p13, %p3456_p7 }
 0x152   : > { %p3026_p3 = por %p3025_p9, %p3024_p0 }
 0x153   : > { %p3020_p11 = pneg %p3019_p6 }
 0x155   : > { %p3027_p4 = pnand %p3026_p3, %p3020_p11 }
 0x157   : > { %3030 = shalt.err (!%p3027_p4)
}
 0x158   : > { %s4607_s29 = sld [smem:[#allocation38_spill]]  ;;  %s4608_s18 = sld [smem:[#allocation37_spill]] }
 0x159   : > { %s4609_s27 = sld [smem:[#allocation36_spill]]  ;;  %s2198_s25 = sadd.s32 4294967294, %s3265_s16  }
 0x15a   : > { %2574 = dma.hbm_to_vmem [thread:$0]  (!%p4600_p8), %s4606_s2, 16, %s476_s15, [#allocation21]  }
 0x15b   : > { %p4610_p5 = scmp.eq.s32.totalorder %s3560_s10, 0  ;;  %p4611_p1 = scmp.eq.s32.totalorder %s3265_s16, 0 }
 0x15c   : > { %p357_p12 = scmp.eq.s32.totalorder %s3425_s17, 3  ;;  %p363_p13 = scmp.eq.s32.totalorder %s2198_s25, 3 }
 0x15d   : > { %p4613_p6 = scmp.eq.s32.totalorder %s3425_s17, 0  ;;  %s2309_s5 = sshll.u32 %s3257_s14, 4 }
 0x15e   : > { %s57_s12 = sadd.s32 1, %s4607_s29  ;;  %p64_p7 = scmp.ne.s32.totalorder %s4607_s29, %s4608_s18 }
 0x15f   : > { %s3747_s11 = scalar_select %p4610_p5, %s4607_s29, %s57_s12  }
 0x160   : > { %p3751_p2 = por %p4611_p1, %p64_p7  ;;  %p70_p10 = scmp.ne.s32.totalorder %s4608_s18, %s4609_s27 }
 0x161   : > { %s486_s15 = sand.u32 1, %s4607_s29   ;;  %p3765_p8 = por %p357_p12, %p64_p7 }
 0x162   : > { %p3760_p11 = por %p4613_p6, %p70_p10  ;;  %p3769_p0 = por %p363_p13, %p70_p10 }
 0x163   : > { %s4615_s10 = scalar_select %p3765_p8, 1, 0 }
 0x164   : > { %s4616_s0 = scalar_select %p3769_p0, 1, 0 }
 0x165   : > { %s2216_s21 = sshll.u32 %s486_s15, 7  ;;  %s497_s1 = sadd.s32 %s2309_s5, %s3589_s13 }
 0x166   : > { %s490_s19 = scalar_lea.vmem [#allocation2], %s2216_s21  ;;  %s2220_s18 = sshll.u32 %s497_s1, 7 }
 0x167   : > { %s500_s7 = sshll.u32 %s490_s19, 4  ;;  %s4617_s12 = sld [smem:[#allocation46_spill]]  ;;  %s3775_s7 = int_to_ptr.vmem [resolvable:$true] %s500_s7 }
 0x168   : > { %p4618_p9 = scmp.lt.s32.totalorder %s3265_s16, 4  ;;  %s3790_s21 = scalar_lea.sflag [#allocation3], %s486_s15 }
 0x16a   : > { %p3786_p3 = pnand %p4618_p9, %p3751_p2 }
 0x16c   : > { %p3033_p7 = pneg %p3786_p3 }
 0x16d   : > { %s3780_s29 = scalar_lea.hbm %s4617_s12, %s2220_s18  ;;  %s3036_s19 = scalar_lea.hbm %s4617_s12, 8192 }
 0x16e   : > { %s3031_s5 = scalar_lea.hbm %s3780_s29, 2048  ;;  %p3037_p2 = scmp.lt.u32.totalorder %s3780_s29, %s4617_s12 }
 0x16f   : > { %p3032_p4 = scmp.ne.s32.totalorder %s3780_s29, %s3031_s5  ;;  %p3038_p10 = scmp.lt.u32.totalorder %s3036_s19, %s3031_s5 }
 0x170   : > { %p3040_p13 = scmp.lt.u32.totalorder %s3031_s5, %s3780_s29 }
 0x171   : > { %p3034_p5 = pnand %p3033_p7, %p3032_p4  ;;  %p3039_p12 = por %p3038_p10, %p3037_p2 }
 0x173   : > { %p3035_p1 = pneg %p3034_p5  ;;  %p3041_p6 = por %p3040_p13, %p3039_p12 }
 0x175   : > { %p3042_p9 = pnand %p3041_p6, %p3035_p1 }
 0x177   : > { %3045 = shalt.err (!%p3042_p9)
}
 0x178   : > { %s3046_s15 = scalar_lea.vmem %s3775_s7, 2048  ;;  %s3281_s25 = smov [#allocation2]  }
 0x179   : > { %p3047_p4 = scmp.ne.s32.totalorder %s3775_s7, %s3046_s15  ;;  %s3051_s22 = sshll.u32 %s3281_s25, 4  ;;  %s3052_s22 = int_to_ptr.vmem [resolvable:$false] %s3051_s22 }
 0x17a   : > { %s3053_s1 = scalar_lea.vmem %s3052_s22, 4096  ;;  %p3054_p8 = scmp.lt.s32.totalorder %s3775_s7, %s3052_s22 }
 0x17b   : > { %p3049_p5 = pnand %p3047_p4, %p3033_p7  ;;  %p3055_p2 = scmp.lt.s32.totalorder %s3053_s1, %s3046_s15 }
 0x17d   : > { %p3050_p0 = pneg %p3049_p5  ;;  %p3056_p10 = por %p3055_p2, %p3054_p8 }
 0x17f   : > { %p3057_p12 = pnand %p3056_p10, %p3050_p0 }
 0x181   : > { %3060 = shalt.err (!%p3057_p12)
}
 0x182   : > { %s4620_s5 = smov 8   ;;  %s4621_s19 = smov 128  }
 0x183   : > { %s4622_s18 = sld [smem:[#allocation34_spill]]  ;;  %s4623_s27 = sld [smem:[#allocation33_spill]] }
 0x184   : > { %s4624_s25 = sld [smem:[#allocation32_spill]]  ;;  %p4625_p8 = scmp.lt.s32.totalorder %s3571_s28, 15 }
 0x185   : > { %2578 = dma.hbm_to_vmem [thread:$0]  (!%p3786_p3), %s3780_s29, 2048, %s3775_s7, %s3790_s21, %s4621_s19, %s4621_s19, %s4620_s5  }
 0x186   : > { %s4691_s28 = smov (!%p4625_p8, %s3571_s28), 15  ;;  %p4626_p0 = scmp.lt.s32.totalorder %s3581_s3, 15 }
 0x187   : > { %p4627_p13 = scmp.eq.s32.totalorder %s3265_s16, 0  ;;  %p4628_p4 = scmp.eq.s32.totalorder %s3425_s17, 0 }
 0x188   : > { %s4693_s3 = smov (!%p4626_p0, %s3581_s3), 15  ;;  %s2229_s29 = sshll.u32 %s4691_s28, 1 }
 0x189   : > { %s129_s2 = sadd.s32 1, %s4622_s18  ;;  %p136_p7 = scmp.ne.s32.totalorder %s4622_s18, %s4623_s27 }
 0x18a   : > { %p142_p1 = scmp.ne.s32.totalorder %s4623_s27, %s4624_s25  ;;  %s125_s15 = ssub.s32 %s4691_s28, %s4693_s3 }
 0x18b   : > { %s539_s22 = sand.u32 1, %s4622_s18   ;;  %s126_s1 = sor.u32 %s125_s15, %s3557_s30 }
 0x18c   : > { %p138_p6 = por %p136_p7, %p4627_p13  ;;  %p127_p9 = scmp.eq.s32.totalorder %s126_s1, 0 }
 0x18d   : > { %p3838_p5 = por %p142_p1, %p4628_p4  ;;  %s2227_s7 = sshll.u32 %s539_s22, 4 }
 0x18e   : > { %s4695_s18 = smov (!%p127_p9, %s4622_s18), %s129_s2  ;;  %s551_s21 = sadd.s32 %s2229_s29, %s3589_s13 }
 0x18f   : > { %s4629_s4 = scalar_select %p3838_p5, 1, 0 }
 0x190   : > { %s2231_s6 = sshll.u32 %s551_s21, 7  ;;  %s541_s8 = scalar_lea.vmem [#allocation7], %s2227_s7 }
 0x191   : > { %s554_s27 = sshll.u32 %s541_s8, 4  ;;  %s4630_s12 = sld [smem:[#allocation48_spill]]  ;;  %s3851_s27 = int_to_ptr.vmem [resolvable:$true] %s554_s27 }
 0x192   : > { %p4631_p3 = scmp.lt.s32.totalorder %s3265_s16, 4 }
 0x194   : > { %p3855_p2 = pnand %p4631_p3, %p138_p6 }
 0x196   : > { %p3063_p12 = pneg %p3855_p2 }
 0x197   : > { %s3849_s30 = scalar_lea.hbm %s4630_s12, %s2231_s6  ;;  %s3066_s2 = scalar_lea.hbm %s4630_s12, 8192 }
 0x198   : > { %s3061_s13 = scalar_lea.hbm %s3849_s30, 256  ;;  %p3067_p7 = scmp.lt.u32.totalorder %s3849_s30, %s4630_s12 }
 0x199   : > { %p3062_p10 = scmp.ne.s32.totalorder %s3849_s30, %s3061_s13  ;;  %p3068_p1 = scmp.lt.u32.totalorder %s3066_s2, %s3061_s13 }
 0x19a   : > { %p3070_p6 = scmp.lt.u32.totalorder %s3061_s13, %s3849_s30 }
 0x19b   : > { %p3064_p8 = pnand %p3063_p12, %p3062_p10  ;;  %p3069_p13 = por %p3068_p1, %p3067_p7 }
 0x19d   : > { %p3065_p0 = pneg %p3064_p8  ;;  %p3071_p9 = por %p3070_p6, %p3069_p13 }
 0x19f   : > { %p3072_p4 = pnand %p3071_p9, %p3065_p0 }
 0x1a1   : > { %3075 = shalt.err (!%p3072_p4)
}
 0x1a2   : > { %s3076_s1 = scalar_lea.vmem %s3851_s27, 256  ;;  %s3282_s7 = smov [#allocation7]  }
 0x1a3   : > { %p3077_p3 = scmp.ne.s32.totalorder %s3851_s27, %s3076_s1  ;;  %s3081_s29 = sshll.u32 %s3282_s7, 4  ;;  %s3082_s29 = int_to_ptr.vmem [resolvable:$false] %s3081_s29 }
 0x1a4   : > { %s3083_s21 = scalar_lea.vmem %s3082_s29, 512  ;;  %p3084_p5 = scmp.lt.s32.totalorder %s3851_s27, %s3082_s29 }
 0x1a5   : > { %p3079_p10 = pnand %p3077_p3, %p3063_p12  ;;  %p3085_p7 = scmp.lt.s32.totalorder %s3083_s21, %s3076_s1 }
 0x1a7   : > { %p3080_p8 = pneg %p3079_p10  ;;  %p3086_p1 = por %p3085_p7, %p3084_p5 }
 0x1a9   : > { %p3087_p13 = pnand %p3086_p1, %p3080_p8 }
 0x1ab   : > { %3090 = shalt.err (!%p3087_p13)
}
 0x1ac   : > { %2584 = dma.hbm_to_vmem [thread:$0]  (!%p3855_p2), %s3849_s30, 256, %s3851_s27, %s3611_s9, %s4621_s19, %s4621_s19, %s4620_s5  }
 0x1ad   : > { %s4633_s25 = sld [smem:[#allocation42_spill]] }
 0x1b3   : > { %p4634_p12 = scmp.ne.s32.totalorder %s4633_s25, 0 }
 0x1b4   : > { %s4635_s3 = sld [smem:[#allocation37_spill]] (!%p4634_p12) }
 0x1b5   : > { %566 = sbr.rel (%p4634_p12) target bundleno = 1370 (0x55a), region = 68 }
 0x1ba   : > { %s3891_s13 = sand.u32 (!%p4634_p12), 1, %s4635_s3  }
 0x1bb   : > { %s2233_s6 = sshll.u32 (!%p4634_p12), %s3891_s13, 7  ;;  %s569_s8 = scalar_lea.sflag (!%p4634_p12), [#allocation3], %s3891_s13 }
 0x1bc   : > { %s3897_s28 = scalar_lea.vmem [#allocation2], %s2233_s6 }
 0x1bd   : > { %3176 = dma.done.wait (%p3760_p11), %s569_s8, 2048  }
 0x1be   : > { %3178 = vsyncadd (%p3760_p11), %s569_s8, 4294965248  ;;  %s4636_s9 = sld [smem:[#allocation35_spill]]  ;;  %s4637_s5 = sld [smem:[#allocation45_spill]] }
 0x1bf   : > { %s577_s19 = sand.u32 1, %s3425_s17  }
 0x1c0   : > { %s578_s2 = scalar_lea.sflag [#allocation6], %s577_s19 }
 0x1c4   : > { %s579_s27 = sand.u32 1, %s4636_s9   ;;  %p4638_p5 = scmp.ne.s32.totalorder %s4637_s5, 0 }
 0x1c5   : > { %s3905_s30 = sshll.u32 %s579_s27, 4 }
 0x1c6   : > { %s581_s15 = scalar_lea.vmem [#allocation5], %s3905_s30 }
 0x1c7   : > { %3180 = dma.done.wait (%p4638_p5), %s578_s2, 256  }
 0x1c8   : > { %3182 = vsyncadd (%p4638_p5), %s578_s2, 4294967040  ;;  %s4639_s22 = sld [smem:[#allocation33_spill]]  ;;  %p4640_p11 = scmp.ne.s32.totalorder %s4629_s4, 0 }
 0x1ce   : > { %s588_s1 = sand.u32 1, %s4639_s22  }
 0x1cf   : > { %s3913_s23 = sshll.u32 %s588_s1, 4 }
 0x1d0   : > { %s590_s7 = scalar_lea.vmem [#allocation7], %s3913_s23 }
 0x1d1   : > { %3184 = dma.done.wait (%p4640_p11), %s578_s2, 256  }
 0x1d2   : > { %3186 = vsyncadd (%p4640_p11), %s578_s2, 4294967040  ;;  %p4641_p2 = scmp.eq.s32.totalorder %s3425_s17, 0 }
 0x1d4   : > { %3188 = dma.done.wait (%p4641_p2), [#allocation9], 512   ;;  %p4642_p0 = pmov %p4641_p2 }
 0x1d6   : > { %3190 = vsyncadd (%p4642_p0), [#allocation9], 4294966784  ;;  %p4643_p6 = pmov %p4642_p0 }
 0x1d7   : > { %p4644_p9 = pmov %p4642_p0 }
 0x1d8   : > { %3192 = dma.done.wait (%p4643_p6), [#allocation12], 48  }
 0x1d9   : > { %3194 = vsyncadd (%p4644_p9), [#allocation12], 4294967248  ;;  %p4645_p4 = pmov %p4642_p0 }
 0x1da   : > { %p4646_p3 = pmov %p4642_p0 }
 0x1db   : > { %3196 = dma.done.wait (%p4645_p4), [#allocation15], 32  }
 0x1dc   : > { %3198 = vsyncadd (%p4646_p3), [#allocation15], 4294967264  ;;  %p4647_p10 = pmov %p4642_p0 }
 0x1dd   : > { %p4648_p8 = pmov %p4642_p0 }
 0x1de   : > { %3200 = dma.done.wait (%p4647_p10), [#allocation18], 32  }
 0x1df   : > { %3202 = vsyncadd (%p4648_p8), [#allocation18], 4294967264  ;;  %p4649_p7 = pmov %p4642_p0 }
 0x1e0   : > { %p4650_p1 = pmov %p4642_p0 }
 0x1e1   : > { %3204 = dma.done.wait (%p4649_p7), [#allocation21], 16  }
 0x1e2   : > { %3206 = vsyncadd (%p4650_p1), [#allocation21], 4294967280  ;;  %v3283_v0 = vmov 0.0   ;;  %vm3284_vm0 = vmmov 0   ;;  %v2739_v1 = vld [vmem:[#allocation8] sm:$0xff]   ;;  %vm725_vm1 = vcmask 130048  }
 0x1e3   : > { %2362 = vmatprep.subr.bf16.mxu0 %v3283_v0  ;;  %2364 = vmatprep.mubr.msk.bf16.mxu0 %vm3284_vm0, %v3283_v0  ;;  %v3942_v2 = vld [vmem:[%s3897_s28] sm:$0xff]  ;;  %v3945_v3 = vld [vmem:[%s3897_s28 + $0x8] sm:$0xff]  ;;  %v3948_v4 = vld [vmem:[%s3897_s28 + $0x10] sm:$0xff]  ;;  %s4651_s4 = sld [smem:[#allocation39_spill]]  ;;  %vm1320_vm2 = vcmask 1045504   ;;  %vm1179_vm3 = vcmask 1047552  }
 0x1e4   : > { %2368 = vmatprep.subr.bf16.mxu1 %v2739_v1  ;;  %v812_v5 = vpack.c.bf16 %v3945_v3, %v3942_v2  ;;  %v3953_v6 = vld [vmem:[%s3897_s28 + $0x18] sm:$0xff]  ;;  %2363 = vmatpush3.bf16.msra.mxu0 %v2739_v1  ;;  %v714_v7 = vld [vmem:[%s581_s15] sm:$0xff]  ;;  %v3965_v12 = vld [vmem:[%s3897_s28 + $0x28] sm:$0xff]  ;;  %vm1180_vm4 = vsmask.f32 7424  ;;  %vm1136_vm6 = vcmask 1040384  }
 0x1e5   : > { %v715_v8 = vld [vmem:[%s581_s15 + $0x8] sm:$0xff]  ;;  %2369 = vmatpush3.bf16.msra.mxu1 %v2739_v1  ;;  %v813_v9 = vpack.c.bf16 %v3953_v6, %v3948_v4  ;;  %v3962_v11 = vld [vmem:[%s3897_s28 + $0x20] sm:$0xff]  ;;  %2386 = vmatprep.subr.bf16.mxu0 %v3283_v0  ;;  %v3973_v14 = vld [vmem:[%s3897_s28 + $0x30] sm:$0xff]  ;;  %vm1137_vm7 = vsmask.f32 256  ;;  %vm1240_vm9 = vcmask 31744  }
 0x1e6   : > { %v716_v10 = vpack.c.bf16 %v715_v8, %v714_v7  ;;  %2370 = vmatprep.mubr.msk.bf16.mxu1 %vm725_vm1, %v812_v5  ;;  %v814_v13 = vpack.c.bf16 %v3965_v12, %v3962_v11  ;;  %v3976_v15 = vld [vmem:[%s3897_s28 + $0x38] sm:$0xff]  ;;  %v804_v16 = vld [vmem:[%s3897_s28 + $0x40] sm:$0xff]  ;;  %v805_v19 = vld [vmem:[%s3897_s28 + $0x48] sm:$0xff]  ;;  %vm1265_vm10 = vcmask 64512   ;;  %vm1303_vm11 = vcmask 97280   ;;  %p4659_p0 = scmp.ne.s32.totalorder %s4615_s10, 0 }
 0x1e7   : > { %v997_v17 = vld [vmem:[%s590_s7] sm:$0xff]  ;;  %v998_v18 = vld [vmem:[%s590_s7 + $0x8] sm:$0xff]  ;;  %v815_v21 = vpack.c.bf16 %v3976_v15, %v3973_v14  ;;  %v816_v22 = vpack.c.bf16 %v805_v19, %v804_v16  ;;  %s3285_s7 = smov 4   ;;  %vm4076_vm5 = vmand %vm1179_vm3, %vm1180_vm4  ;;  %vm1760_vm12 = vcmask 1041408  }
 0x1e8   : > { %2365 = vmatmul.mubr.msk.bf16.vlgmr.msra.gmra.mrb[0].mxu0 %vm725_vm1, %v716_v10  ;;  %2371 = vmatmul.mubr.msk.bf16.vlgmr.msra.gmra.mrb[0].mxu1 %vm725_vm1, %v813_v9  ;;  %v999_v20 = vpack.c.bf16 %v998_v18, %v997_v17  ;;  %v3992_v23 = vld [vmem:[%s3897_s28 + $0x50] sm:$0xff]  ;;  %v3995_v24 = vld [vmem:[%s3897_s28 + $0x58] sm:$0xff]  ;;  %v808_v25 = vld [vmem:[%s3897_s28 + $0x60] sm:$0xff] }
 0x1e9   : > { %2387 = vmatpush3.bf16.msra.mxu0 %v2739_v1  ;;  %2374 = vmatprep.mubr.msk.bf16.mxu1 %vm725_vm1, %v814_v13  ;;  %v809_v26 = vld [vmem:[%s3897_s28 + $0x68] sm:$0xff]  ;;  %v817_v27 = vpack.c.bf16 %v3995_v24, %v3992_v23  ;;  %v810_v29 = vld [vmem:[%s3897_s28 + $0x70] sm:$0xff]  ;;  %v811_v30 = vld [vmem:[%s3897_s28 + $0x78] sm:$0xff]  ;;  %p688_p13 = scmp.gt.s32.totalorder %s4651_s4, 0  ;;  %p701_p12 = scmp.lt.s32.totalorder %s4651_s4, 1 }
 0x1ea   : > { %2388 = vmatprep.mubr.msk.bf16.mxu0 %vm3284_vm0, %v3283_v0  ;;  %v818_v28 = vpack.c.bf16 %v809_v26, %v808_v25  ;;  %v819_v31 = vpack.c.bf16 %v811_v30, %v810_v29  ;;  %v4010_v32 = vld [vmem:[#allocation13] ss:$0 sm:$0xff]  ;;  %v4015_v34 = vld [vmem:[#allocation14] ss:$0 sm:$0xff]  ;;  %v2740_v49 = vld [vmem:[#allocation10 + $0x8] sm:$0x3f]  }
 0x1eb   : > { %s689_s17 = scalar_select %p688_p13, 1, 0  ;;  %2498 = vmatprep.subr.msk.bf16.mxu0 %vm1320_vm2, %v2740_v49  ;;  %v1322_v55 = vsel %vm1320_vm2, %v2740_v49, 0  ;;  %2499 = vmatprep.subr.msk.bf16.mxu1 %vm1320_vm2, %v2740_v49  ;;  %vm4185_vm8 = vmand %vm1136_vm6, %vm1137_vm7 }
 0x1ec   : > { %s702_s5 = scalar_select %p701_p12, 1, 0  ;;  %2465 = vmatpush3.bf16.msra.mxu1 %v1322_v55 }
 0x1ed   : > { %s690_s29 = scvt.s32.f32 %s689_s17 }
 0x1ee   : > { %s4012_s19 = scvt.s32.f32 %s702_s5 }
 0x1ef   : > { %s693_s21 = sshrl.u32 %s690_s29, 16  ;;  %p692_p5 = scmp.ne.f32.partialorder %s690_s29, %s690_s29 }
 0x1f0   : > { %2389 = vmatmul.mubr.msk.bf16.vlgmr.msra.gmra.mrb[4].mxu0 %vm725_vm1, %v999_v20  ;;  %2375 = vmatmul.mubr.msk.bf16.gmra.mrb[4].mxu1 %vm725_vm1, %v815_v21  ;;  %s694_s25 = sand.u32 1, %s693_s21  ;;  %s706_s2 = sshrl.u32 %s4012_s19, 16  ;;  %v4046_v20 = vld [vmem:[#allocation10] sm:$0x3f]  }
 0x1f1   : > { %2378 = vmatprep.mubr.msk.bf16.mxu1 %vm725_vm1, %v816_v22  ;;  %s695_s3 = sadd.s32 32767, %s694_s25  ;;  %s4031_s22 = sand.u32 1, %s706_s2  ;;  %2393 = vmatpush3.bf16.msra.mxu0 %v1322_v55 }
 0x1f2   : > { %s696_s8 = sadd.s32 %s695_s3, %s690_s29  ;;  %s708_s1 = sadd.s32 32767, %s4031_s22  ;;  %2500 = vmatprep.subr.msk.bf16.mxu0 %vm1320_vm2, %v4046_v20 }
 0x1f3   : > { %s697_s9 = sand.u32 4294901760, %s696_s8  ;;  %s4054_s23 = sadd.s32 %s708_s1, %s4012_s19 }
 0x1f4   : > { %s4697_s9 = smov (%p692_p5, %s697_s9), 2143289344  ;;  %p705_p11 = scmp.ne.f32.partialorder %s4012_s19, %s4012_s19 }
 0x1f5   : > { %s700_s27 = sshrl.u32 %s4697_s9, 16  ;;  %s710_s17 = sand.u32 4294901760, %s4054_s23 }
 0x1f6   : > { %s791_s30 = sshll.u32 %s700_s27, 16  ;;  %s4699_s17 = smov (%p705_p11, %s710_s17), 2143289344 }
 0x1f7   : > { %s4029_s15 = sor.u32 %s791_s30, %s700_s27  ;;  %s3286_s29 = smov 8  }
 0x1f8   : > { %2379 = vmatmul.mubr.msk.bf16.gmra.mrb[8].mxu1 %vm725_vm1, %v817_v27  ;;  %v793_v1 = vstv %s4029_s15  ;;  %s713_s21 = sshrl.u32 %s4699_s17, 16  ;;  %s4356_s8 = scalar_lea.vmem [#allocation22], %s2233_s6 }
 0x1f9   : > { %2382 = vmatprep.mubr.msk.bf16.mxu1 %vm725_vm1, %v818_v28  ;;  %s1051_s25 = sshll.u32 %s713_s21, 16  ;;  %s4656_s6 = sld [smem:[#allocation40_spill]] }
 0x1fa   : > { %s1052_s3 = sor.u32 %s1051_s25, %s713_s21  ;;  %s2312_s9 = sshll.u32 %s4651_s4, 4 }
 0x1fb   : > { %s1972_s19 = sshll.u32 %s4356_s8, 4  ;;  %s4657_s15 = sld [smem:[#allocation58_spill]]  ;;  %s4423_s19 = int_to_ptr.vmem [resolvable:$true] %s1972_s19 }
 0x1fc   : > { %s3091_s23 = scalar_lea.vmem %s4423_s19, 2048 }
 0x1fd   : > { %p3092_p2 = scmp.ne.s32.totalorder %s4423_s19, %s3091_s23 }
 0x1ff   : > { %s2301_s5 = sshll.u32 %s4656_s6, 5  ;;  %p3093_p6 = pnand %p3092_p2, %p4659_p0 }
 0x200   : > { %2383 = vmatmul.mubr.msk.bf16.gmra.mrb[12].mxu1 %vm725_vm1, %v819_v31  ;;  %s1969_s4 = sadd.s32 %s2312_s9, %s2301_s5 }
 0x201   : > { %s2302_s27 = sshll.u32 %s1969_s4, 7  ;;  %s4658_s1 = smov %s4657_s15 }
 0x202   : > { %s4430_s22 = scalar_lea.hbm %s4657_s15, %s2302_s27  ;;  %p3094_p9 = pneg %p3093_p6 }
 0x2bb   : > { %v763_v33 = vpop.f32.mrb[0].mxu0  ;;  %v2372_v35 = vpop.f32.mrb[0].mxu1 }
 0x2bc   : > { %v777_v36 = vmul.f32 %v4010_v32, %v763_v33  ;;  %v2366_v37 = vpop.f32.mrb[1].mxu0  ;;  %v943_v38 = vmul.f32 %v2372_v35, %v4010_v32  ;;  %v878_v39 = vpop.f32.mrb[1].mxu1 }
 0x2bd   : > { %v766_v40 = vpop.f32.mrb[2].mxu0  ;;  %v941_v41 = vmul.f32 %v4010_v32, %v878_v39  ;;  %v2373_v42 = vpop.f32.mrb[2].mxu1 }
 0x2be   : > { %v786_v43 = vadd.f32 %v4015_v34, %v777_v36  ;;  %v778_v44 = vmul.f32 %v4010_v32, %v766_v40  ;;  %v2367_v45 = vpop.f32.mrb[3].mxu0  ;;  %v959_v46 = vadd.f32 %v4015_v34, %v943_v38  ;;  %v944_v47 = vmul.f32 %v2373_v42, %v4010_v32  ;;  %v881_v48 = vpop.f32.mrb[3].mxu1 }
 0x2bf   : > { %v957_v50 = vadd.f32 %v4015_v34, %v941_v41  ;;  %v942_v51 = vmul.f32 %v4010_v32, %v881_v48 }
 0x2c0   : > { %v788_v52 = vmax.f32 %v786_v43, 0.0  ;;  %v787_v53 = vadd.f32 %v4015_v34, %v778_v44  ;;  %v960_v54 = vadd.f32 %v4015_v34, %v944_v47  ;;  %v975_v58 = vmax.f32 %v959_v46, 0.0 }
 0x2c1   : > { %v958_v56 = vadd.f32 %v4015_v34, %v942_v51  ;;  %v973_v61 = vmax.f32 %v957_v50, 0.0 }
 0x2c2   : > { %v789_v57 = vmax.f32 %v787_v53, 0.0  ;;  %v976_v59 = vmax.f32 %v960_v54, 0.0 }
 0x2c3   : > { %v1037_v60 = vpop.f32.mrb[4].mxu0  ;;  %v974_v62 = vmax.f32 %v958_v56, 0.0  ;;  %v2376_v0 = vpop.f32.mrb[4].mxu1 }
 0x2c4   : > { %v790_v63 = vpack.c.bf16 %v789_v57, %v788_v52  ;;  %v2390_v5 = vpop.f32.mrb[5].mxu0  ;;  %v947_v7 = vmul.f32 %v2376_v0, %v4010_v32  ;;  %v894_v8 = vpop.f32.mrb[5].mxu1  ;;  %v4040_v9 = vpack.c.bf16 %v976_v59, %v975_v58  ;;  %v1044_v18 = vmul.f32 %v4010_v32, %v1037_v60 }
 0x2c5   : > { %v1040_v10 = vpop.f32.mrb[6].mxu0  ;;  %v4042_v13 = vpack.c.bf16 %v974_v62, %v973_v61  ;;  %v945_v16 = vmul.f32 %v4010_v32, %v894_v8  ;;  %v2377_v17 = vpop.f32.mrb[6].mxu1 }
 0x2c6   : > { %v2391_v19 = vpop.f32.mrb[7].mxu0  ;;  %v963_v21 = vadd.f32 %v4015_v34, %v947_v7  ;;  %v948_v22 = vmul.f32 %v2377_v17, %v4010_v32  ;;  %v897_v25 = vpop.f32.mrb[7].mxu1  ;;  %v4050_v26 = vmul.bf16 %v793_v1, %v790_v63  ;;  %v1074_v27 = vshll.u32 %v4040_v9, 16 }
 0x2c7   : > { %1202 = vrot.lane.b32.xlu0 %v4042_v13, %s3285_s7  ;;  %v961_v28 = vadd.f32 %v4015_v34, %v945_v16  ;;  %v946_v29 = vmul.f32 %v4010_v32, %v897_v25  ;;  %v1067_v30 = vshll.u32 %v4042_v13, 16  ;;  %v1071_v31 = vshrl.u32 %v4040_v9, 16 }
 0x2c8   : > { %v964_v33 = vadd.f32 %v4015_v34, %v948_v22  ;;  %v1064_v35 = vshrl.u32 %v4042_v13, 16  ;;  %v1153_v36 = vrot.slane %v1074_v27, 1  ;;  %v979_v37 = vmax.f32 %v963_v21, 0.0 }
 0x2c9   : > { %v977_v38 = vmax.f32 %v961_v28, 0.0  ;;  %v962_v39 = vadd.f32 %v4015_v34, %v946_v29  ;;  %v1151_v40 = vrot.slane %v1067_v30, 1  ;;  %v1057_v43 = vshrl.u32 %v4050_v26, 16 }
 0x2ca   : > { %v980_v41 = vmax.f32 %v964_v33, 0.0  ;;  %v1060_v44 = vshll.u32 %v4050_v26, 16  ;;  %v1046_v45 = vadd.f32 %v4015_v34, %v1044_v18  ;;  %v1073_v49 = vrot.slane %v1071_v31, 7 }
 0x2cb   : > { %v978_v46 = vmax.f32 %v962_v39, 0.0  ;;  %1204 = vrot.lane.b32.xlu0 %v4040_v9, %s3285_s7  ;;  %v1152_v47 = vor.u32 %v1151_v40, %v1064_v35  ;;  %v2380_v48 = vpop.f32.mrb[8].mxu1  ;;  %v1045_v50 = vmul.f32 %v4010_v32, %v1040_v10  ;;  %v1066_v51 = vrot.slane %v1064_v35, 7 }
 0x2cc   : > { %v951_v52 = vmul.f32 %v2380_v48, %v4010_v32  ;;  %v910_v53 = vpop.f32.mrb[9].mxu1  ;;  %v1154_v54 = vor.u32 %v1153_v36, %v1071_v31  ;;  %v1149_v55 = vrot.slane %v1060_v44, 1  ;;  %v4099_v60 = vpack.c.bf16 %v980_v41, %v979_v37 }
 0x2cd   : > { %v1183_v56 = vsel %vm4076_vm5, %v1152_v47, 0  ;;  %v949_v57 = vmul.f32 %v4010_v32, %v910_v53  ;;  %v2381_v58 = vpop.f32.mrb[10].mxu1  ;;  %v4097_v59 = vpack.c.bf16 %v978_v46, %v977_v38  ;;  %v1047_v1 = vadd.f32 %v4015_v34, %v1045_v50 }
 0x2ce   : > { %1226 = vrot.lane.b32.xlu1 %v1183_v56, %s3286_s29  ;;  %v967_v61 = vadd.f32 %v4015_v34, %v951_v52  ;;  %v952_v62 = vmul.f32 %v2381_v58, %v4010_v32  ;;  %v913_v63 = vpop.f32.mrb[11].mxu1  ;;  %v1150_v0 = vor.u32 %v1149_v55, %v1057_v43  ;;  %v1184_v18 = vsel %vm4076_vm5, %v1154_v54, 0 }
 0x2cf   : > { %1200 = vrot.lane.b32.xlu0 %v4050_v26, %s3285_s7  ;;  %v965_v5 = vadd.f32 %v4015_v34, %v949_v57  ;;  %v950_v7 = vmul.f32 %v4010_v32, %v913_v63  ;;  %v1078_v8 = vshrl.u32 %v4097_v59, 16  ;;  %v1081_v10 = vshll.u32 %v4097_v59, 16 }
 0x2d0   : > { %v983_v16 = vmax.f32 %v967_v61, 0.0  ;;  %v968_v17 = vadd.f32 %v4015_v34, %v952_v62  ;;  %v1048_v19 = vmax.f32 %v1046_v45, 0.0  ;;  %v1182_v25 = vsel %vm4076_vm5, %v1150_v0, 0 }
 0x2d1   : > { %v981_v21 = vmax.f32 %v965_v5, 0.0  ;;  %v966_v22 = vadd.f32 %v4015_v34, %v950_v7  ;;  %v1155_v28 = vrot.slane %v1081_v10, 1  ;;  %v1085_v31 = vshrl.u32 %v4099_v60, 16 }
 0x2d2   : > { %v984_v29 = vmax.f32 %v968_v17, 0.0  ;;  %1228 = vrot.lane.b32.xlu1 %v1184_v18, %s3286_s29  ;;  %v1088_v33 = vshll.u32 %v4099_v60, 16  ;;  %v1049_v35 = vmax.f32 %v1047_v1, 0.0  ;;  %v4127_v39 = vor.u32 %v1067_v30, %v1066_v51 }
 0x2d3   : > { %v982_v36 = vmax.f32 %v966_v22, 0.0  ;;  %1206 = vrot.lane.b32.xlu0 %v4097_v59, %s3285_s7  ;;  %v2384_v37 = vpop.f32.mrb[12].mxu1  ;;  %v1156_v38 = vor.u32 %v1155_v28, %v1078_v8  ;;  %v4131_v40 = vor.u32 %v1074_v27, %v1073_v49  ;;  %v1059_v50 = vrot.slane %v1057_v43, 7 }
 0x2d4   : > { %v955_v41 = vmul.f32 %v2384_v37, %v4010_v32  ;;  %v926_v45 = vpop.f32.mrb[13].mxu1  ;;  %v1157_v46 = vrot.slane %v1088_v33, 1  ;;  %v4136_v47 = vpack.c.bf16 %v984_v29, %v983_v16  ;;  %v1050_v48 = vpack.c.bf16 %v1049_v35, %v1048_v19 }
 0x2d5   : > { %v953_v52 = vmul.f32 %v4010_v32, %v926_v45  ;;  %v2385_v13 = vpop.f32.mrb[14].mxu1  ;;  %v1080_v30 = vrot.slane %v1078_v8, 7  ;;  %v993_v51 = vpack.c.bf16 %v982_v36, %v981_v21  ;;  %v1185_v53 = vsel %vm4076_vm5, %v1156_v38, 0 }
 0x2d6   : > { %1224 = vrot.lane.b32.xlu1 %v1182_v25, %s3286_s29  ;;  %v971_v9 = vadd.f32 %v4015_v34, %v955_v41  ;;  %v956_v27 = vmul.f32 %v2385_v13, %v4010_v32  ;;  %v929_v49 = vpop.f32.mrb[15].mxu1  ;;  %v1158_v54 = vor.u32 %v1157_v46, %v1085_v31  ;;  %v1053_v1 = vstv %s1052_s3 }
 0x2d7   : > { %1208 = vrot.lane.b32.xlu0 %v4099_v60, %s3285_s7  ;;  %v969_v43 = vadd.f32 %v4015_v34, %v953_v52  ;;  %v954_v55 = vmul.f32 %v4010_v32, %v929_v49  ;;  %v1092_v56 = vshrl.u32 %v993_v51, 16  ;;  %v1095_v57 = vshll.u32 %v993_v51, 16 }
 0x2d8   : > { %v987_v58 = vmax.f32 %v971_v9, 0.0  ;;  %v972_v59 = vadd.f32 %v4015_v34, %v956_v27  ;;  %v1186_v61 = vsel %vm4076_vm5, %v1158_v54, 0  ;;  %v1099_v7 = vshrl.u32 %v4136_v47, 16 }
 0x2d9   : > { %v985_v62 = vmax.f32 %v969_v43, 0.0  ;;  %v970_v63 = vadd.f32 %v4015_v34, %v954_v55  ;;  %v1159_v0 = vrot.slane %v1095_v57, 1  ;;  %v1102_v32 = vshll.u32 %v4136_v47, 16 }
 0x2da   : > { %v988_v5 = vmax.f32 %v972_v59, 0.0  ;;  %1230 = vrot.lane.b32.xlu1 %v1185_v53, %s3286_s29  ;;  %v4160_v17 = vor.u32 %v1060_v44, %v1059_v50  ;;  %v4162_v18 = vor.u32 %v1081_v10, %v1080_v30  ;;  %v1055_v21 = vmul.bf16 %v1053_v1, %v1050_v48 }
 0x2db   : > { %v986_v8 = vmax.f32 %v970_v63, 0.0  ;;  %1232 = vrot.lane.b32.xlu0 %v1186_v61, %s3286_s29  ;;  %v1160_v16 = vor.u32 %v1159_v0, %v1092_v56  ;;  %v1161_v34 = vrot.slane %v1102_v32, 1  ;;  %v1087_v22 = vrot.slane %v1085_v31, 7 }
 0x2dc   : > { %v996_v19 = vpack.c.bf16 %v988_v5, %v987_v58  ;;  %v1094_v25 = vrot.slane %v1092_v56, 7  ;;  %v1101_v29 = vrot.slane %v1099_v7, 7  ;;  %v1120_v37 = vshrl.u32 %v1055_v21, 16 }
 0x2dd   : > { %v995_v28 = vpack.c.bf16 %v986_v8, %v985_v62  ;;  %v1162_v35 = vor.u32 %v1161_v34, %v1099_v7  ;;  %v1187_v26 = vsel %vm4076_vm5, %v1160_v16, 0  ;;  %v1090_v50 = vor.u32 %v1088_v33, %v1087_v22 }
 0x2de   : > { %1210 = vrot.lane.b32.xlu1 %v993_v51, %s3285_s7  ;;  %v1113_v36 = vshrl.u32 %v996_v19, 16  ;;  %v1116_v38 = vshll.u32 %v996_v19, 16  ;;  %v1122_v45 = vrot.slane %v1120_v37, 7  ;;  %v4173_v52 = vor.u32 %v1095_v57, %v1094_v25 }
 0x2df   : > { %1212 = vrot.lane.b32.xlu0 %v4136_v47, %s3285_s7  ;;  %v1106_v44 = vshrl.u32 %v995_v28, 16  ;;  %v1109_v10 = vshll.u32 %v995_v28, 16  ;;  %v1188_v31 = vsel %vm4076_vm5, %v1162_v35, 0  ;;  %v1123_v47 = vshll.u32 %v1055_v21, 16 }
 0x2e0   : > { %v1115_v41 = vrot.slane %v1113_v36, 7  ;;  %v4176_v13 = vor.u32 %v1102_v32, %v1101_v29  ;;  %v1165_v51 = vrot.slane %v1116_v38, 1  ;;  %v1140_v61 = vsel %vm4185_vm8, 0, %v4127_v39  ;;  %v2742_v39 = vld [vmem:[#allocation10 + $0x10] sm:$0x3f]  }
 0x2e1   : > { %v1108_v46 = vrot.slane %v1106_v44, 7  ;;  %v1163_v48 = vrot.slane %v1109_v10, 1  ;;  %v4183_v49 = vor.u32 %v1123_v47, %v1122_v45  ;;  %v1167_v43 = vrot.slane %v1123_v47, 1 }
 0x2e2   : > { %1234 = vrot.lane.b32.xlu1 %v1187_v26, %s3286_s29  ;;  %v4181_v27 = vor.u32 %v1116_v38, %v1115_v41  ;;  %v1166_v54 = vor.u32 %v1165_v51, %v1113_v36  ;;  %v1141_v42 = vsel %vm4185_vm8, 0, %v4131_v40  ;;  %v1429_v32 = vsel %vm1320_vm2, %v4046_v20, 0 }
 0x2e3   : > { %1236 = vrot.lane.b32.xlu0 %v1188_v31, %s3286_s29  ;;  %v1164_v30 = vor.u32 %v1163_v48, %v1106_v44  ;;  %v4179_v9 = vor.u32 %v1109_v10, %v1108_v46  ;;  %v1148_v33 = vsel %vm4185_vm8, 0, %v4183_v49  ;;  %v1168_v56 = vor.u32 %v1167_v43, %v1120_v37  ;;  %v1735_v49 = vld [vmem:[#allocation11] sm:$0x3] }
 0x2e4   : > { %v1190_v55 = vsel %vm4076_vm5, %v1166_v54, 0  ;;  %v1139_v34 = vsel %vm4185_vm8, 0, %v4160_v17  ;;  %v1142_v20 = vsel %vm4185_vm8, 0, %v4162_v18  ;;  %v1143_v17 = vsel %vm4185_vm8, 0, %v1090_v50  ;;  %2502 = vmatprep.subr.msk.bf16.mxu1 %vm1760_vm12, %v1735_v49 }
 0x2e5   : > { %v1189_v53 = vsel %vm4076_vm5, %v1164_v30, 0  ;;  %v1191_v57 = vsel %vm4076_vm5, %v1168_v56, 0  ;;  %v1550_v18 = vsel %vm1320_vm2, %v2742_v39, 0  ;;  %v1144_v10 = vsel %vm4185_vm8, 0, %v4173_v52 }
 0x2e6   : > { %1214 = vrot.lane.b32.xlu1 %v995_v28, %s3285_s7  ;;  %v1145_v31 = vsel %vm4185_vm8, 0, %v4176_v13  ;;  %v1146_v47 = vsel %vm4185_vm8, 0, %v4179_v9  ;;  %v1147_v54 = vsel %vm4185_vm8, 0, %v4181_v27  ;;  %v1762_v60 = vsel %vm1760_vm12, %v1735_v49, 0 }
 0x2e7   : > { %1285 = vrot.lane.b32.xlu0 %v996_v19, %s3285_s7 }
 0x2ea   : > { %1238 = vrot.lane.b32.xlu1 %v1189_v53, %s3286_s29 }
 0x2eb   : > { %1529 = vrot.lane.b32.xlu0 %v1055_v21, %s3285_s7  ;;  %s3287_s7 = smov [#allocation22]  }
 0x2ec   : > { %s3095_s17 = sshll.u32 %s3287_s7, 4  ;;  %s3096_s17 = int_to_ptr.vmem [resolvable:$false] %s3095_s17 }
 0x2ed   : > { %s3097_s21 = scalar_lea.vmem %s3096_s17, 4096  ;;  %p3098_p4 = scmp.lt.s32.totalorder %s4423_s19, %s3096_s17 }
 0x2ee   : > { %1288 = vrot.lane.b32.xlu1 %v1190_v55, %s3286_s29  ;;  %p3099_p3 = scmp.lt.s32.totalorder %s3097_s21, %s3091_s23 }
 0x2f0   : > { %p3100_p10 = por %p3099_p3, %p3098_p4 }
 0x2f2   : > { %1532 = vrot.lane.b32.xlu1 %v1191_v57, %s3286_s29  ;;  %p3101_p8 = pnand %p3100_p10, %p3094_p9 }
 0x339   : > { %v1203_v58 = vpop.permute.xlu0 %1202 }
 0x33a   : > { %v1246_v62 = vsel %vm1240_vm9, %v1140_v61, %v1203_v58 }
 0x33d   : > { %v1205_v59 = vpop.permute.xlu0 %1204 }
 0x33e   : > { %v1249_v5 = vsel %vm1240_vm9, %v1141_v42, %v1205_v59 }
 0x340   : > { %v1227_v63 = vpop.permute.xlu1 %1226 }
 0x341   : > { %v1269_v0 = vsel %vm1265_vm10, %v1246_v62, %v1227_v63  ;;  %v1201_v1 = vpop.permute.xlu0 %1200 }
 0x342   : > { %2394 = vmatprep.mubr.msk.bf16.mxu0 %vm1303_vm11, %v1269_v0  ;;  %v1243_v19 = vsel %vm1240_vm9, %v1139_v34, %v1201_v1  ;;  %v4292_v34 = vld [vmem:[#allocation17] ss:$0 sm:$0xff] }
 0x344   : > { %v1229_v7 = vpop.permute.xlu1 %1228 }
 0x345   : > { %v1271_v8 = vsel %vm1265_vm10, %v1249_v5, %v1229_v7  ;;  %v1207_v16 = vpop.permute.xlu0 %1206 }
 0x346   : > { %2395 = vmatmul.mubr.msk.bf16.vlgmr.msra.gmra.mrb[8].mxu0 %vm1303_vm11, %v1271_v8  ;;  %v1252_v25 = vsel %vm1240_vm9, %v1142_v20, %v1207_v16 }
 0x347   : > { %2411 = vmatpush3.bf16.msra.mxu0 %v1429_v32 }
 0x348   : > { %v1225_v40 = vpop.permute.xlu1 %1224  ;;  %2501 = vmatprep.subr.msk.bf16.mxu0 %vm1320_vm2, %v2742_v39 }
 0x349   : > { %v1267_v21 = vsel %vm1265_vm10, %v1243_v19, %v1225_v40  ;;  %v1209_v22 = vpop.permute.xlu0 %1208 }
 0x34a   : > { %2412 = vmatprep.mubr.msk.bf16.mxu0 %vm1303_vm11, %v1267_v21  ;;  %v1255_v29 = vsel %vm1240_vm9, %v1143_v17, %v1209_v22 }
 0x34c   : > { %v1231_v28 = vpop.permute.xlu1 %1230 }
 0x34d   : > { %v1273_v35 = vsel %vm1265_vm10, %v1252_v25, %v1231_v28  ;;  %v1233_v36 = vpop.permute.xlu0 %1232 }
 0x34e   : > { %v1275_v37 = vsel %vm1265_vm10, %v1255_v29, %v1233_v36  ;;  %2398 = vmatprep.mubr.msk.bf16.mxu1 %vm1303_vm11, %v1273_v35 }
 0x34f   : > { %2399 = vmatmul.mubr.msk.bf16.vlgmr.msra.gmra.mrb[16].mxu1 %vm1303_vm11, %v1275_v37 }
 0x350   : > { %v1211_v26 = vpop.permute.xlu1 %1210  ;;  %2447 = vmatpush3.bf16.msra.mxu1 %v1762_v60 }
 0x351   : > { %v1213_v44 = vpop.permute.xlu0 %1212  ;;  %v1258_v38 = vsel %vm1240_vm9, %v1144_v10, %v1211_v26 }
 0x352   : > { %2413 = vmatmul.mubr.msk.bf16.vlgmr.msra.gmra.mrb[8].mxu0 %vm1303_vm11, %v1269_v0  ;;  %v1261_v45 = vsel %vm1240_vm9, %v1145_v31, %v1213_v44 }
 0x353   : > { %2429 = vmatpush3.bf16.msra.mxu0 %v1550_v18  ;;  %2416 = vmatprep.mubr.msk.bf16.mxu0 %vm1303_vm11, %v1271_v8 }
 0x354   : > { %v1235_v41 = vpop.permute.xlu1 %1234 }
 0x355   : > { %v1277_v46 = vsel %vm1265_vm10, %v1258_v38, %v1235_v41  ;;  %v1237_v48 = vpop.permute.xlu0 %1236 }
 0x356   : > { %v1279_v50 = vsel %vm1265_vm10, %v1261_v45, %v1237_v48  ;;  %2402 = vmatprep.mubr.msk.bf16.mxu1 %vm1303_vm11, %v1277_v46 }
 0x357   : > { %2403 = vmatmul.mubr.msk.bf16.gmra.mrb[20].mxu1 %vm1303_vm11, %v1279_v50 }
 0x358   : > { %v1215_v52 = vpop.permute.xlu1 %1214 }
 0x359   : > { %v1286_v13 = vpop.permute.xlu0 %1285  ;;  %v1264_v30 = vsel %vm1240_vm9, %v1146_v47, %v1215_v52 }
 0x35a   : > { %2417 = vmatmul.mubr.msk.bf16.gmra.mrb[12].mxu0 %vm1303_vm11, %v1273_v35  ;;  %v1292_v43 = vsel %vm1240_vm9, %v1147_v54, %v1286_v13 }
 0x35b   : > { %2420 = vmatprep.mubr.msk.bf16.mxu0 %vm1303_vm11, %v1275_v37 }
 0x35c   : > { %v1239_v51 = vpop.permute.xlu1 %1238 }
 0x35d   : > { %v1281_v53 = vsel %vm1265_vm10, %v1264_v30, %v1239_v51  ;;  %v1530_v56 = vpop.permute.xlu0 %1529 }
 0x35e   : > { %2406 = vmatprep.mubr.msk.bf16.mxu1 %vm1303_vm11, %v1281_v53  ;;  %v1536_v57 = vsel %vm1240_vm9, %v1148_v33, %v1530_v56 }
 0x360   : > { %v1289_v55 = vpop.permute.xlu1 %1288 }
 0x361   : > { %v1294_v9 = vsel %vm1265_vm10, %v1292_v43, %v1289_v55 }
 0x362   : > { %2407 = vmatmul.mubr.msk.bf16.gmra.mrb[24].mxu1 %vm1303_vm11, %v1294_v9  ;;  %2421 = vmatmul.mubr.msk.bf16.gmra.mrb[16].mxu0 %vm1303_vm11, %v1277_v46 }
 0x363   : > { %2424 = vmatprep.mubr.msk.bf16.mxu0 %vm1303_vm11, %v1279_v50 }
 0x364   : > { %v1533_v58 = vpop.permute.xlu1 %1532 }
 0x365   : > { %v1538_v27 = vsel %vm1265_vm10, %v1536_v57, %v1533_v58 }
 0x36a   : > { %2425 = vmatmul.mubr.msk.bf16.gmra.mrb[20].mxu0 %vm1303_vm11, %v1281_v53 }
 0x36b   : > { %2430 = vmatprep.mubr.msk.bf16.mxu0 %vm1303_vm11, %v1271_v8  ;;  %v4290_v8 = vld [vmem:[#allocation16] ss:$0 sm:$0xff] }
 0x372   : > { %2431 = vmatmul.mubr.msk.bf16.vlgmr.msra.gmra.mrb[8].mxu0 %vm1303_vm11, %v1273_v35 }
 0x373   : > { %2434 = vmatprep.mubr.msk.bf16.mxu0 %vm1303_vm11, %v1275_v37 }
 0x37a   : > { %2435 = vmatmul.mubr.msk.bf16.gmra.mrb[12].mxu0 %vm1303_vm11, %v1277_v46 }
 0x37b   : > { %2438 = vmatprep.mubr.msk.bf16.mxu0 %vm1303_vm11, %v1279_v50 }
 0x382   : > { %2439 = vmatmul.mubr.msk.bf16.gmra.mrb[16].mxu0 %vm1303_vm11, %v1281_v53 }
 0x383   : > { %2442 = vmatprep.mubr.msk.bf16.mxu0 %vm1303_vm11, %v1294_v9 }
 0x38a   : > { %2443 = vmatmul.mubr.msk.bf16.gmra.mrb[20].mxu0 %vm1303_vm11, %v1538_v27 }
 0x422   : > { %v2400_v33 = vpop.f32.mrb[16].mxu1 }
 0x423   : > { %v1374_v59 = vpop.f32.mrb[17].mxu1 }
 0x424   : > { %v2401_v61 = vpop.f32.mrb[18].mxu1 }
 0x425   : > { %v1377_v62 = vpop.f32.mrb[19].mxu1 }
 0x42a   : > { %v2404_v63 = vpop.f32.mrb[20].mxu1 }
 0x42b   : > { %v1390_v0 = vpop.f32.mrb[21].mxu1 }
 0x42c   : > { %v2405_v1 = vpop.f32.mrb[22].mxu1 }
 0x42d   : > { %v1393_v42 = vpop.f32.mrb[23].mxu1 }
 0x435   : > { %v4282_v5 = vpop.f32.mrb[24].mxu1 }
 0x436   : > { %v4284_v7 = vpop.f32.mrb[25].mxu1 }
 0x437   : > { %v4286_v32 = vpop.f32.mrb[26].mxu1 }
 0x438   : > { %v4288_v39 = vpop.f32.mrb[27].mxu1 }
 0x445   : > { %v2432_v16 = vpop.f32.mrb[8].mxu0 }
 0x446   : > { %v1674_v19 = vmul.f32 %v2432_v16, %v4290_v8  ;;  %v1586_v40 = vpop.f32.mrb[9].mxu0 }
 0x447   : > { %v1672_v21 = vmul.f32 %v4290_v8, %v1586_v40  ;;  %v2433_v22 = vpop.f32.mrb[10].mxu0 }
 0x448   : > { %v1697_v20 = vadd.f32 %v4292_v34, %v1674_v19  ;;  %v1675_v25 = vmul.f32 %v2433_v22, %v4290_v8  ;;  %v1589_v17 = vpop.f32.mrb[11].mxu0 }
 0x449   : > { %v1695_v28 = vadd.f32 %v4292_v34, %v1672_v21  ;;  %v1673_v29 = vmul.f32 %v4290_v8, %v1589_v17 }
 0x44a   : > { %v1698_v35 = vadd.f32 %v4292_v34, %v1675_v25  ;;  %v1713_v37 = vmax.f32 %v1697_v20, 0.0 }
 0x44b   : > { %v1696_v36 = vadd.f32 %v4292_v34, %v1673_v29  ;;  %v1711_v18 = vmax.f32 %v1695_v28, 0.0 }
 0x44c   : > { %v1714_v26 = vmax.f32 %v1698_v35, 0.0 }
 0x44d   : > { %v1712_v44 = vmax.f32 %v1696_v36, 0.0  ;;  %v2436_v10 = vpop.f32.mrb[12].mxu0 }
 0x44e   : > { %v1728_v38 = vpack.c.bf16 %v1714_v26, %v1713_v37  ;;  %v2466_v31 = vadd.f32 %v2436_v10, %v2400_v33  ;;  %v1602_v41 = vpop.f32.mrb[13].mxu0 }
 0x44f   : > { %v1727_v45 = vpack.c.bf16 %v1712_v44, %v1711_v18  ;;  %v2467_v46 = vadd.f32 %v1602_v41, %v1374_v59  ;;  %v2437_v48 = vpop.f32.mrb[14].mxu0 }
 0x450   : > { %v1678_v50 = vmul.f32 %v2466_v31, %v4290_v8  ;;  %v2468_v52 = vadd.f32 %v2437_v48, %v2401_v61  ;;  %v1605_v47 = vpop.f32.mrb[15].mxu0 }
 0x451   : > { %v1676_v13 = vmul.f32 %v2467_v46, %v4290_v8  ;;  %v2469_v30 = vadd.f32 %v1605_v47, %v1377_v62  ;;  %2448 = vmatprep.mubr.msk.bf16.mxu1 %vm1240_vm9, %v1727_v45 }
 0x452   : > { %v1701_v51 = vadd.f32 %v4292_v34, %v1678_v50  ;;  %v1679_v53 = vmul.f32 %v2468_v52, %v4290_v8  ;;  %2449 = vmatmul.mubr.msk.bf16.vlgmr.msra.gmra.mrb[28].mxu1 %vm1240_vm9, %v1728_v38 }
 0x453   : > { %v1699_v54 = vadd.f32 %v4292_v34, %v1676_v13  ;;  %v1677_v43 = vmul.f32 %v2469_v30, %v4290_v8 }
 0x454   : > { %v1702_v55 = vadd.f32 %v4292_v34, %v1679_v53  ;;  %v1717_v57 = vmax.f32 %v1701_v51, 0.0 }
 0x455   : > { %v1700_v56 = vadd.f32 %v4292_v34, %v1677_v43  ;;  %v2440_v9 = vpop.f32.mrb[16].mxu0  ;;  %v1715_v60 = vmax.f32 %v1699_v54, 0.0 }
 0x456   : > { %v1718_v58 = vmax.f32 %v1702_v55, 0.0  ;;  %v2470_v27 = vadd.f32 %v2440_v9, %v2404_v63  ;;  %v1618_v49 = vpop.f32.mrb[17].mxu0  ;;  %v4338_v55 = vld [vmem:[#allocation19] ss:$0 sm:$0xff] }
 0x457   : > { %v1716_v33 = vmax.f32 %v1700_v56, 0.0  ;;  %v2471_v59 = vadd.f32 %v1618_v49, %v1390_v0  ;;  %v2441_v61 = vpop.f32.mrb[18].mxu0  ;;  %v4340_v56 = vld [vmem:[#allocation20] ss:$0 sm:$0xff] }
 0x458   : > { %v1730_v62 = vpack.c.bf16 %v1718_v58, %v1717_v57  ;;  %v1682_v16 = vmul.f32 %v2470_v27, %v4290_v8  ;;  %v2472_v19 = vadd.f32 %v2441_v61, %v2405_v1  ;;  %v1621_v40 = vpop.f32.mrb[19].mxu0 }
 0x459   : > { %v1729_v21 = vpack.c.bf16 %v1716_v33, %v1715_v60  ;;  %v1680_v22 = vmul.f32 %v2471_v59, %v4290_v8  ;;  %v2473_v20 = vadd.f32 %v1621_v40, %v1393_v42 }
 0x45a   : > { %v1705_v25 = vadd.f32 %v4292_v34, %v1682_v16  ;;  %v1683_v17 = vmul.f32 %v2472_v19, %v4290_v8 }
 0x45b   : > { %v1703_v63 = vadd.f32 %v4292_v34, %v1680_v22  ;;  %v1681_v28 = vmul.f32 %v2473_v20, %v4290_v8  ;;  %2452 = vmatprep.mubr.msk.bf16.mxu1 %vm1240_vm9, %v1729_v21 }
 0x45c   : > { %v1706_v0 = vadd.f32 %v4292_v34, %v1683_v17  ;;  %2453 = vmatmul.mubr.msk.bf16.gmra.mrb[32].mxu1 %vm1240_vm9, %v1730_v62  ;;  %v1721_v35 = vmax.f32 %v1705_v25, 0.0 }
 0x45d   : > { %v1704_v1 = vadd.f32 %v4292_v34, %v1681_v28  ;;  %v2444_v29 = vpop.f32.mrb[20].mxu0  ;;  %v1719_v26 = vmax.f32 %v1703_v63, 0.0 }
 0x45e   : > { %v1722_v36 = vmax.f32 %v1706_v0, 0.0  ;;  %v2474_v42 = vadd.f32 %v2444_v29, %v4282_v5  ;;  %v1634_v37 = vpop.f32.mrb[21].mxu0 }
 0x45f   : > { %v1720_v18 = vmax.f32 %v1704_v1, 0.0  ;;  %v2475_v44 = vadd.f32 %v1634_v37, %v4284_v7  ;;  %v2445_v10 = vpop.f32.mrb[22].mxu0 }
 0x460   : > { %v1732_v38 = vpack.c.bf16 %v1722_v36, %v1721_v35  ;;  %v1686_v31 = vmul.f32 %v2474_v42, %v4290_v8  ;;  %v2476_v41 = vadd.f32 %v2445_v10, %v4286_v32  ;;  %v1637_v45 = vpop.f32.mrb[23].mxu0 }
 0x461   : > { %v1731_v46 = vpack.c.bf16 %v1720_v18, %v1719_v26  ;;  %v1684_v48 = vmul.f32 %v2475_v44, %v4290_v8  ;;  %v2477_v50 = vadd.f32 %v1637_v45, %v4288_v39 }
 0x462   : > { %v1709_v52 = vadd.f32 %v4292_v34, %v1686_v31  ;;  %v1687_v5 = vmul.f32 %v2476_v41, %v4290_v8 }
 0x463   : > { %v1707_v47 = vadd.f32 %v4292_v34, %v1684_v48  ;;  %v1685_v7 = vmul.f32 %v2477_v50, %v4290_v8  ;;  %2456 = vmatprep.mubr.msk.bf16.mxu1 %vm1240_vm9, %v1731_v46 }
 0x464   : > { %v1710_v13 = vadd.f32 %v4292_v34, %v1687_v5  ;;  %2457 = vmatmul.mubr.msk.bf16.gmra.mrb[36].mxu1 %vm1240_vm9, %v1732_v38  ;;  %v1725_v30 = vmax.f32 %v1709_v52, 0.0 }
 0x465   : > { %v1708_v32 = vadd.f32 %v4292_v34, %v1685_v7  ;;  %v1723_v53 = vmax.f32 %v1707_v47, 0.0 }
 0x466   : > { %v1726_v51 = vmax.f32 %v1710_v13, 0.0  ;;  %v2743_v13 = vld [vmem:[%s3897_s28 + $0x40] sm:$0xff] }
 0x467   : > { %v1724_v39 = vmax.f32 %v1708_v32, 0.0 }
 0x468   : > { %v1734_v54 = vpack.c.bf16 %v1726_v51, %v1725_v30 }
 0x469   : > { %v1733_v43 = vpack.c.bf16 %v1724_v39, %v1723_v53 }
 0x46b   : > { %2460 = vmatprep.mubr.msk.bf16.mxu1 %vm1240_vm9, %v1733_v43 }
 0x46c   : > { %2461 = vmatmul.mubr.msk.bf16.gmra.mrb[40].mxu1 %vm1240_vm9, %v1734_v54  ;;  %v2744_v54 = vld [vmem:[%s3897_s28 + $0x48] sm:$0xff] }
 0x525   : > { %v2450_v8 = vpop.f32.mrb[28].mxu1 }
 0x526   : > { %v1870_v9 = vmul.f32 %v2450_v8, %v4338_v55  ;;  %v1798_v57 = vpop.f32.mrb[29].mxu1 }
 0x527   : > { %v1868_v34 = vmul.f32 %v4338_v55, %v1798_v57  ;;  %v2451_v58 = vpop.f32.mrb[30].mxu1 }
 0x528   : > { %v1893_v27 = vadd.f32 %v4340_v56, %v1870_v9  ;;  %v1871_v49 = vmul.f32 %v2451_v58, %v4338_v55  ;;  %v1801_v60 = vpop.f32.mrb[31].mxu1 }
 0x529   : > { %v1891_v33 = vadd.f32 %v4340_v56, %v1868_v34  ;;  %v1869_v59 = vmul.f32 %v4338_v55, %v1801_v60 }
 0x52a   : > { %v1909_v61 = vadd.f32 %v1893_v27, %v3948_v4  ;;  %v1894_v62 = vadd.f32 %v4340_v56, %v1871_v49 }
 0x52b   : > { %v1907_v16 = vadd.f32 %v1891_v33, %v3942_v2  ;;  %v1892_v19 = vadd.f32 %v4340_v56, %v1869_v59 }
 0x52c   : > { %v1925_v40 = vmax.f32 %v1909_v61, 0.0  ;;  %v1910_v21 = vadd.f32 %v1894_v62, %v3953_v6  ;;  %v2745_v61 = vld [vmem:[%s3897_s28 + $0x70] sm:$0xff] }
 0x52d   : > { %v1923_v22 = vmax.f32 %v1907_v16, 0.0  ;;  %v1908_v20 = vadd.f32 %v1892_v19, %v3945_v3  ;;  %v2746_v19 = vld [vmem:[%s3897_s28 + $0x60] sm:$0xff] }
 0x52e   : > { %1941 = vst.msk [vmem:[%s4356_s8 + $0x10] sm:$0xff] %vm725_vm1, %v1925_v40  ;;  %v1926_v4 = vmax.f32 %v1910_v21, 0.0 }
 0x52f   : > { %1939 = vst.msk [vmem:[%s4356_s8] sm:$0xff] %vm725_vm1, %v1923_v22  ;;  %v1924_v2 = vmax.f32 %v1908_v20, 0.0  ;;  %v2454_v25 = vpop.f32.mrb[32].mxu1  ;;  %v2747_v20 = vld [vmem:[%s3897_s28 + $0x78] sm:$0xff] }
 0x530   : > { %1942 = vst.msk [vmem:[%s4356_s8 + $0x18] sm:$0xff] %vm725_vm1, %v1926_v4  ;;  %v1874_v6 = vmul.f32 %v2454_v25, %v4338_v55  ;;  %v1814_v17 = vpop.f32.mrb[33].mxu1 }
 0x531   : > { %1940 = vst.msk [vmem:[%s4356_s8 + $0x8] sm:$0xff] %vm725_vm1, %v1924_v2  ;;  %v1872_v3 = vmul.f32 %v4338_v55, %v1814_v17  ;;  %v2455_v63 = vpop.f32.mrb[34].mxu1  ;;  %v2748_v2 = vld [vmem:[%s3897_s28 + $0x68] sm:$0xff]  ;;  %s1956_s28 = scalar_lea.sflag [#allocation4], %s3891_s13 }
 0x532   : > { %v1897_v28 = vadd.f32 %v4340_v56, %v1874_v6  ;;  %v1875_v0 = vmul.f32 %v2455_v63, %v4338_v55  ;;  %v1817_v1 = vpop.f32.mrb[35].mxu1 }
 0x533   : > { %v1895_v29 = vadd.f32 %v4340_v56, %v1872_v3  ;;  %v1873_v35 = vmul.f32 %v4338_v55, %v1817_v1 }
 0x534   : > { %v1913_v36 = vadd.f32 %v1897_v28, %v3973_v14  ;;  %v1898_v42 = vadd.f32 %v4340_v56, %v1875_v0 }
 0x535   : > { %v1911_v37 = vadd.f32 %v1895_v29, %v3962_v11  ;;  %v1896_v26 = vadd.f32 %v4340_v56, %v1873_v35 }
 0x536   : > { %v1929_v18 = vmax.f32 %v1913_v36, 0.0  ;;  %v1914_v44 = vadd.f32 %v1898_v42, %v3976_v15 }
 0x537   : > { %v1927_v10 = vmax.f32 %v1911_v37, 0.0  ;;  %v1912_v38 = vadd.f32 %v1896_v26, %v3965_v12  ;;  %v2458_v31 = vpop.f32.mrb[36].mxu1 }
 0x538   : > { %1945 = vst.msk [vmem:[%s4356_s8 + $0x30] sm:$0xff] %vm725_vm1, %v1929_v18  ;;  %v1930_v41 = vmax.f32 %v1914_v44, 0.0  ;;  %v1878_v14 = vmul.f32 %v2458_v31, %v4338_v55  ;;  %v1830_v45 = vpop.f32.mrb[37].mxu1 }
 0x539   : > { %1943 = vst.msk [vmem:[%s4356_s8 + $0x20] sm:$0xff] %vm725_vm1, %v1927_v10  ;;  %v1928_v11 = vmax.f32 %v1912_v38, 0.0  ;;  %v1876_v46 = vmul.f32 %v4338_v55, %v1830_v45  ;;  %v2459_v48 = vpop.f32.mrb[38].mxu1 }
 0x53a   : > { %1946 = vst.msk [vmem:[%s4356_s8 + $0x38] sm:$0xff] %vm725_vm1, %v1930_v41  ;;  %v1901_v15 = vadd.f32 %v4340_v56, %v1878_v14  ;;  %v1879_v12 = vmul.f32 %v2459_v48, %v4338_v55  ;;  %v1833_v50 = vpop.f32.mrb[39].mxu1 }
 0x53b   : > { %1944 = vst.msk [vmem:[%s4356_s8 + $0x28] sm:$0xff] %vm725_vm1, %v1928_v11  ;;  %v1899_v52 = vadd.f32 %v4340_v56, %v1876_v46  ;;  %v1877_v5 = vmul.f32 %v4338_v55, %v1833_v50 }
 0x53c   : > { %v1917_v47 = vadd.f32 %v1901_v15, %v3992_v23  ;;  %v1902_v7 = vadd.f32 %v4340_v56, %v1879_v12 }
 0x53d   : > { %v1915_v32 = vadd.f32 %v2743_v13, %v1899_v52  ;;  %v1900_v30 = vadd.f32 %v4340_v56, %v1877_v5 }
 0x53e   : > { %v1933_v51 = vmax.f32 %v1917_v47, 0.0  ;;  %v1918_v53 = vadd.f32 %v1902_v7, %v3995_v24 }
 0x53f   : > { %v1931_v39 = vmax.f32 %v1915_v32, 0.0  ;;  %v1916_v43 = vadd.f32 %v2744_v54, %v1900_v30  ;;  %v2462_v8 = vpop.f32.mrb[40].mxu1 }
 0x540   : > { %1949 = vst.msk [vmem:[%s4356_s8 + $0x50] sm:$0xff] %vm725_vm1, %v1933_v51  ;;  %v1934_v23 = vmax.f32 %v1918_v53, 0.0  ;;  %v1882_v9 = vmul.f32 %v2462_v8, %v4338_v55  ;;  %v1846_v57 = vpop.f32.mrb[41].mxu1 }
 0x541   : > { %1947 = vst.msk [vmem:[%s4356_s8 + $0x40] sm:$0xff] %vm725_vm1, %v1931_v39  ;;  %v1932_v34 = vmax.f32 %v1916_v43, 0.0  ;;  %v1880_v24 = vmul.f32 %v4338_v55, %v1846_v57  ;;  %v2463_v58 = vpop.f32.mrb[42].mxu1 }
 0x542   : > { %1950 = vst.msk [vmem:[%s4356_s8 + $0x58] sm:$0xff] %vm725_vm1, %v1934_v23  ;;  %v1905_v27 = vadd.f32 %v4340_v56, %v1882_v9  ;;  %v1883_v49 = vmul.f32 %v2463_v58, %v4338_v55  ;;  %v1849_v60 = vpop.f32.mrb[43].mxu1 }
 0x543   : > { %1948 = vst.msk [vmem:[%s4356_s8 + $0x48] sm:$0xff] %vm725_vm1, %v1932_v34  ;;  %v1903_v33 = vadd.f32 %v4340_v56, %v1880_v24  ;;  %v1881_v59 = vmul.f32 %v4338_v55, %v1849_v60 }
 0x544   : > { %v1921_v62 = vadd.f32 %v2745_v61, %v1905_v27  ;;  %v1906_v16 = vadd.f32 %v4340_v56, %v1883_v49 }
 0x545   : > { %v1919_v40 = vadd.f32 %v2746_v19, %v1903_v33  ;;  %v1904_v21 = vadd.f32 %v4340_v56, %v1881_v59 }
 0x546   : > { %v1937_v22 = vmax.f32 %v1921_v62, 0.0  ;;  %v1922_v4 = vadd.f32 %v2747_v20, %v1906_v16 }
 0x547   : > { %v1935_v55 = vmax.f32 %v1919_v40, 0.0  ;;  %v1920_v25 = vadd.f32 %v2748_v2, %v1904_v21 }
 0x548   : > { %1953 = vst.msk [vmem:[%s4356_s8 + $0x70] sm:$0xff] %vm725_vm1, %v1937_v22  ;;  %v1938_v6 = vmax.f32 %v1922_v4, 0.0 }
 0x549   : > { %1951 = vst.msk [vmem:[%s4356_s8 + $0x60] sm:$0xff] %vm725_vm1, %v1935_v55  ;;  %v1936_v56 = vmax.f32 %v1920_v25, 0.0 }
 0x54a   : > { %1954 = vst.msk [vmem:[%s4356_s8 + $0x78] sm:$0xff] %vm725_vm1, %v1938_v6 }
 0x54b   : > { %1952 = vst.msk [vmem:[%s4356_s8 + $0x68] sm:$0xff] %vm725_vm1, %v1936_v56 }
 0x54c   : > { %3104 = shalt.err (!%p3101_p8)
}
 0x54d   : > { %s3105_s25 = scalar_lea.hbm %s4430_s22, 2048  ;;  %s3109_s6 = scalar_lea.hbm %s4658_s1, 8192 }
 0x54e   : > { %p3106_p7 = scmp.ne.s32.totalorder %s4430_s22, %s3105_s25  ;;  %p3110_p12 = scmp.lt.u32.totalorder %s4430_s22, %s4658_s1 }
 0x54f   : > { %p3111_p5 = scmp.lt.u32.totalorder %s3109_s6, %s3105_s25  ;;  %p3113_p2 = scmp.lt.u32.totalorder %s3105_s25, %s4430_s22 }
 0x550   : > { %p3107_p1 = pnand %p3106_p7, %p4659_p0 }
 0x551   : > { %p3112_p11 = por %p3111_p5, %p3110_p12 }
 0x552   : > { %p3108_p13 = pneg %p3107_p1 }
 0x553   : > { %p3114_p6 = por %p3113_p2, %p3112_p11 }
 0x555   : > { %p3115_p9 = pnand %p3114_p6, %p3108_p13 }
 0x557   : > { %3118 = shalt.err (!%p3115_p9)
}
 0x558   : > { %s3288_s4 = smov 128  }
 0x559   : > { %2545 = dma.vmem_to_hbm [thread:$0]  (%p4659_p0), %s4423_s19, 2048, %s4430_s22, %s1956_s28, %s3288_s4, %s3288_s4, %s3286_s29  }
 0x55a PF: > { %s4660_s27 = sld [smem:[#allocation36_spill]]  ;;  %p2608_p4 = scmp.ge.s32.totalorder %s3265_s16, 2 }
 0x55b   : > { %p4661_p3 = scmp.ne.s32.totalorder %s4616_s0, 0 }
 0x55d   : > { %p2586_p10 = pnand %p2608_p4, %p4661_p3 }
 0x560   : > { %s1987_s30 = sand.u32 1, %s4660_s27  }
 0x561   : > { %s1988_s2 = scalar_lea.sflag [#allocation4], %s1987_s30 }
 0x562   : > { %3208 = dma.done.wait (!%p2586_p10), %s1988_s2, 2048  }
 0x563   : > { %3210 = vsyncadd (!%p2586_p10), %s1988_s2, 4294965248  ;;  %s36_s16 = sadd.s32 1, %s3265_s16   ;;  %s4663_s21 = sld [smem:[#allocation33_spill]] }
 0x564   : > { %p4466_p8 = scmp.ge.s32.totalorder %s36_s16, 6   ;;  %s4664_s22 = sld [smem:[#allocation34_spill]] }
 0x565   : > { %s4665_s13 = sld [smem:[#allocation35_spill]]  ;;  %s4666_s29 = smov %s3586_s24 }
 0x566   : > { %s4667_s27 = sld [smem:[#allocation37_spill]]  ;;  %s4668_s28 = sld [smem:[#allocation38_spill]] }
 0x567   : > { %s4669_s0 = sld [smem:[#allocation41_spill]]  ;;  %s4670_s19 = sld [smem:[#allocation43_spill]] }
 0x568   : > { %s4671_s15 = sld [smem:[#allocation44_spill]]  ;;  %s4672_s23 = smov %s4695_s18 }
 0x569   : > { %s4674_s25 = smov %s3233_s26  ;;  %s4675_s26 = smov %s4666_s29 }
 0x56a   : > { %s4676_s29 = smov %s3747_s11  ;;  %s4677_s30 = smov %s3257_s14 }
 0x56b   : > { %s4673_s24 = smov %s4665_s13  ;;  %35 = sbr.rel (!%p4466_p8) target bundleno = 31 (0x1f), region = 175 }
 0x56d   : > { %s4678_s13 = smov %s4669_s0  ;;  %s4679_s14 = smov %s4670_s19 }
 0x572   :  { %1993 = vsyncpa [#allocation3], 1 }
 0x573   :  { %1995 = vsyncpa [#allocation3 + $0x1], 1 }
 0x574   :  { %1996 = vsyncpa [#allocation6], 1 }
 0x575   :  { %1998 = vsyncpa [#allocation6 + $0x1], 1 }
 0x576   :  { %1999 = vsyncpa [#allocation9], 1 }
 0x577   :  { %2000 = vsyncpa [#allocation12], 1 }
 0x578   :  { %2001 = vsyncpa [#allocation15], 1 }
 0x579   :  { %2002 = vsyncpa [#allocation18], 1 }
 0x57a   :  { %2003 = vsyncpa [#allocation21], 1 }
 0x57b   :  { %2004 = vsyncpa [#allocation4], 1 }
 0x57c   :  { %2006 = vsyncpa [#allocation4 + $0x1], 1 }

</bundles_post_ra>
